<compile_context>
chip_gen: v6e
topology: v6e:2x2x1
jax: 0.10.0
libtpu: 0.0.40
codegen_flags: <defaults>
</compile_context>

<pallas_src>
import functools
import math

import jax
import jax.numpy as jnp
from jax.experimental import pallas as pl
from jax.experimental.pallas import tpu as pltpu

_LANE = 128      # TPU lane width; all feature axes are zero-padded to this
_HIDDEN = 64     # Actor_net hidden width (module spec)


def _round_up(n, m):
    return ((n + m - 1) // m) * m


# ----------------------------------------------------------------------------
# Kernel bodies — operate on one [TB, 128] batch tile per grid step.
#   w_ref : [4, 128, 128] bf16   rows: 0=w1, 1=w2, 2=mean head, 3=fc3 head
#   b_ref : [8, 128]      f32    rows: 0=b1, 1=b2, 2=mean bias, 3=fc3 bias
# ----------------------------------------------------------------------------
def _trunk(x_ref, w_ref, b_ref):
    # fc1 + tanh ; fc2 + tanh.  Weights are bf16 in VMEM -> upcast once;
    # activations / transcendentals stay f32 (required on v5e, free elsewhere).
    w1 = w_ref[0].astype(jnp.float32)
    w2 = w_ref[1].astype(jnp.float32)
    h1 = jnp.tanh(jnp.dot(x_ref[...], w1, preferred_element_type=jnp.float32)
                  + b_ref[0:1, :])
    h2 = jnp.tanh(jnp.dot(h1, w2, preferred_element_type=jnp.float32)
                  + b_ref[1:2, :])
    return h2


def _mean_head(h2, w_ref, b_ref):
    wm = w_ref[2].astype(jnp.float32)
    return jnp.dot(h2, wm, preferred_element_type=jnp.float32) + b_ref[2:3, :]


def _probs_head(h2, w_ref, b_ref, action_dim):
    w3 = w_ref[3].astype(jnp.float32)
    logits = jnp.dot(h2, w3, preferred_element_type=jnp.float32) + b_ref[3:4, :]
    # Numerically-stable softmax over the REAL action columns only
    # (lanes >= action_dim are zero padding and must not enter the sum).
    col = jax.lax.broadcasted_iota(jnp.int32, logits.shape, 1)
    valid = col < action_dim
    m = jnp.max(jnp.where(valid, logits, -1e30), axis=1, keepdims=True)
    e = jnp.where(valid, jnp.exp(logits - m), 0.0)
    s = jnp.sum(e, axis=1, keepdims=True)
    return e * pl.reciprocal(s, approx=False)       # divide -> EUP reciprocal


def _actor_box_kernel(x_ref, w_ref, b_ref, mean_ref):
    h2 = _trunk(x_ref, w_ref, b_ref)
    mean_ref[...] = _mean_head(h2, w_ref, b_ref)
    # std = exp(log_std) is input-independent -> computed in the wrapper.


def _actor_cat_kernel(x_ref, w_ref, b_ref, probs_ref, *, action_dim):
    h2 = _trunk(x_ref, w_ref, b_ref)
    probs_ref[...] = _probs_head(h2, w_ref, b_ref, action_dim)


def _actor_fused_kernel(x_ref, w_ref, b_ref, mean_ref, probs_ref, *, action_dim):
    # Shared trunk: fc1/fc2 computed once for both heads (one kernel launch).
    h2 = _trunk(x_ref, w_ref, b_ref)
    mean_ref[...] = _mean_head(h2, w_ref, b_ref)
    probs_ref[...] = _probs_head(h2, w_ref, b_ref, action_dim)


# ----------------------------------------------------------------------------
# Wrappers
# ----------------------------------------------------------------------------
_COMPILER_PARAMS = pltpu.CompilerParams(dimension_semantics=("parallel",))


def _prep_x(x, obs_dim):
    if x.ndim < 2:                      # x = x[np.newaxis, :] in the module
        x = x[None, :]
    x = x.astype(jnp.float32)
    B = x.shape[0]
    TB = _LANE if B >= _LANE else _round_up(B, 8)   # batch tile (multiple of 8)
    Bp = _round_up(B, TB)
    xp = jnp.pad(x, ((0, Bp - B), (0, _LANE - obs_dim)))   # lane-dense input
    return xp, B, Bp, TB


def _specs(TB):
    in_specs = [
        pl.BlockSpec((TB, _LANE), lambda i: (i, 0)),           # x batch tile
        pl.BlockSpec((4, _LANE, _LANE), lambda i: (0, 0, 0)),   # weight slab (const)
        pl.BlockSpec((8, _LANE), lambda i: (0, 0)),             # bias slab (const)
    ]
    out_spec = pl.BlockSpec((TB, _LANE), lambda i: (i, 0))
    return in_specs, out_spec


def actor_forward_box(x, params):
    """Continuous (Box) branch: returns (mean, std) like the PyTorch module."""
    A = params["action_dim"]
    xp, B, Bp, TB = _prep_x(x, params["obs_dim"])
    in_specs, out_spec = _specs(TB)
    mean_pad = pl.pallas_call(
        _actor_box_kernel,
        out_shape=jax.ShapeDtypeStruct((Bp, _LANE), jnp.float32),
        grid=(Bp // TB,),
        in_specs=in_specs,
        out_specs=out_spec,
        compiler_params=_COMPILER_PARAMS,
    )(xp, params["wslab"], params["bslab"])
    mean = mean_pad[:B, :A]
    std = jnp.broadcast_to(jnp.exp(params["log_std"]), (B, A))  # hoisted out
    return mean, std


def actor_forward_categorical(x, params):
    """Discrete branch: returns softmax probs over actions."""
    A = params["action_dim"]
    xp, B, Bp, TB = _prep_x(x, params["obs_dim"])
    in_specs, out_spec = _specs(TB)
    probs_pad = pl.pallas_call(
        functools.partial(_actor_cat_kernel, action_dim=A),
        out_shape=jax.ShapeDtypeStruct((Bp, _LANE), jnp.float32),
        grid=(Bp // TB,),
        in_specs=in_specs,
        out_specs=out_spec,
        compiler_params=_COMPILER_PARAMS,
    )(xp, params["wslab"], params["bslab"])
    return probs_pad[:B, :A]


def actor_forward_fused(x, params):
    """Both heads in one launch (shared tanh trunk) when both are needed."""
    A = params["action_dim"]
    xp, B, Bp, TB = _prep_x(x, params["obs_dim"])
    in_specs, out_spec = _specs(TB)
    mean_pad, probs_pad = pl.pallas_call(
        functools.partial(_actor_fused_kernel, action_dim=A),
        out_shape=(jax.ShapeDtypeStruct((Bp, _LANE), jnp.float32),
                   jax.ShapeDtypeStruct((Bp, _LANE), jnp.float32)),
        grid=(Bp // TB,),
        in_specs=in_specs,
        out_specs=(out_spec, out_spec),
        compiler_params=_COMPILER_PARAMS,
    )(xp, params["wslab"], params["bslab"])
    mean = mean_pad[:B, :A]
    std = jnp.broadcast_to(jnp.exp(params["log_std"]), (B, A))
    probs = probs_pad[:B, :A]
    return mean, std, probs


# ----------------------------------------------------------------------------
# Deterministic parameter init (mirrors nn.Linear default init + Actor_net
# tweaks: head weight *= 0.1, head bias zeroed, log_std = zeros([1, A])).
# Weights are packed, zero-padded to 128 lanes, and stored as bf16 slabs.
# ----------------------------------------------------------------------------
def _linear_init(key, fan_in, fan_out):
    bound = 1.0 / math.sqrt(fan_in)
    kw, kb = jax.random.split(key)
    w = jax.random.uniform(kw, (fan_in, fan_out), jnp.float32, -bound, bound)
    b = jax.random.uniform(kb, (fan_out,), jnp.float32, -bound, bound)
    return w, b


def make_params(key, obs_dim, action_dim, hidden=_HIDDEN):
    assert obs_dim <= _LANE and hidden <= _LANE and action_dim <= _LANE
    k1, k2, k3 = jax.random.split(key, 3)
    w1, b1 = _linear_init(k1, obs_dim, hidden)
    w2, b2 = _linear_init(k2, hidden, hidden)
    wh, _ = _linear_init(k3, hidden, action_dim)
    wh = wh * 0.1                                   # .weight.data.mul_(0.1)
    bh = jnp.zeros((action_dim,), jnp.float32)      # .bias.data.zero_()

    # bf16 weight storage halves weight DMA bytes; round-trip the reference
    # copies through bf16 so kernel and reference use identical values.
    w1_bf, w2_bf, wh_bf = (w.astype(jnp.bfloat16) for w in (w1, w2, wh))

    wslab = jnp.zeros((4, _LANE, _LANE), jnp.bfloat16)
    wslab = wslab.at[0, :obs_dim, :hidden].set(w1_bf)
    wslab = wslab.at[1, :hidden, :hidden].set(w2_bf)
    wslab = wslab.at[2, :hidden, :action_dim].set(wh_bf)   # Box mean head
    wslab = wslab.at[3, :hidden, :action_dim].set(wh_bf)   # Discrete fc3 head

    bslab = jnp.zeros((8, _LANE), jnp.float32)
    bslab = bslab.at[0, :hidden].set(b1)
    bslab = bslab.at[1, :hidden].set(b2)
    bslab = bslab.at[2, :action_dim].set(bh)
    bslab = bslab.at[3, :action_dim].set(bh)

    return {
        "obs_dim": obs_dim, "action_dim": action_dim, "hidden": hidden,
        "wslab": wslab, "bslab": bslab,
        "log_std": jnp.zeros((1, action_dim), jnp.float32),
        # f32 (bf16-rounded) copies for the pure-JAX reference
        "w1": w1_bf.astype(jnp.float32), "b1": b1,
        "w2": w2_bf.astype(jnp.float32), "b2": b2,
        "wh": wh_bf.astype(jnp.float32), "bh": bh,
    }


# ----------------------------------------------------------------------------
# Pure-JAX references for sanity checking
# ----------------------------------------------------------------------------
def _ref_trunk(x, p):
    h = jnp.tanh(x @ p["w1"] + p["b1"])
    return jnp.tanh(h @ p["w2"] + p["b2"])


def _ref_box(x, p):
    h = _ref_trunk(x, p)
    mean = h @ p["wh"] + p["bh"]
    std = jnp.exp(jnp.broadcast_to(p["log_std"], mean.shape))
    return mean, std


def _ref_cat(x, p):
    h = _ref_trunk(x, p)
    return jax.nn.softmax(h @ p["wh"] + p["bh"], axis=1)


if __name__ == "__main__":
    key = jax.random.PRNGKey(0)
    # batch large enough to amortize launch/DMA overhead and fill both v7x TCs
    obs_dim, action_dim, batch = 16, 4, 256

    kx, kp = jax.random.split(key)
    x = jax.random.normal(kx, (batch, obs_dim), jnp.float32)
    params = make_params(kp, obs_dim, action_dim)

    # Fused call: tanh trunk computed once, both heads written (one launch).
    mean, std, probs = actor_forward_fused(x, params)
    jax.block_until_ready((mean, std, probs))

    mean_ref, std_ref = _ref_box(x, params)
    probs_ref = _ref_cat(x, params)
    assert mean.shape == (batch, action_dim) and std.shape == (batch, action_dim)
    assert probs.shape == (batch, action_dim)
    assert jnp.allclose(mean, mean_ref, atol=1e-4), "mean mismatch"
    assert jnp.allclose(std, std_ref, atol=1e-6), "std mismatch"
    assert jnp.allclose(probs, probs_ref, atol=1e-4), "probs mismatch"

    # Individual branch entry points (module semantics: one branch per net).
    mean_b, std_b = actor_forward_box(x, params)
    probs_c = actor_forward_categorical(x, params)
    jax.block_until_ready((mean_b, std_b, probs_c))
    assert jnp.allclose(mean_b, mean, atol=1e-6), "box branch mismatch"
    assert jnp.allclose(std_b, std, atol=1e-6), "std branch mismatch"
    assert jnp.allclose(probs_c, probs, atol=1e-6), "categorical branch mismatch"

    # 1-D observation path (x = x[np.newaxis, :] in the PyTorch forward).
    m1, s1 = actor_forward_box(x[0], params)
    jax.block_until_ready((m1, s1))
    assert m1.shape == (1, action_dim) and s1.shape == (1, action_dim)

    print("KERNEL_OK")
</pallas_src>

<mosaic_0001>
module attributes {stable_mosaic.version = 11 : i64} {
  func.func @_actor_fused_kernel(%arg0: i32, %arg1: memref<128x128xf32, #tpu.memory_space<vmem>>, %arg2: memref<4x128x128xbf16, #tpu.memory_space<vmem>>, %arg3: memref<8x128xf32, #tpu.memory_space<vmem>>, %arg4: memref<128x128xf32, #tpu.memory_space<vmem>>, %arg5: memref<128x128xf32, #tpu.memory_space<vmem>>) attributes {dimension_semantics = [#tpu.dimension_semantics<parallel>], iteration_bounds = array<i64: 2>, scalar_prefetch = 0 : i64, scratch_operands = 0 : i64, tpu.core_type = #tpu.core_type<tc>, window_params = [{transform_indices = @transform_0, window_bounds = array<i64: 128, 128>}, {pipeline_mode = #tpu.pipeline_mode<synchronous>, transform_indices = @transform_1, window_bounds = array<i64: 4, 128, 128>}, {pipeline_mode = #tpu.pipeline_mode<synchronous>, transform_indices = @transform_2, window_bounds = array<i64: 8, 128>}, {transform_indices = @transform_3, window_bounds = array<i64: 128, 128>}, {transform_indices = @transform_4, window_bounds = array<i64: 128, 128>}]} {
    %c0 = arith.constant 0 : index
    %c0_0 = arith.constant 0 : index
    %c0_1 = arith.constant 0 : index
    %0 = vector.load %arg2[%c0, %c0_0, %c0_1] : memref<4x128x128xbf16, #tpu.memory_space<vmem>>, vector<1x128x128xbf16>
    %1 = vector.shape_cast %0 : vector<1x128x128xbf16> to vector<128x128xbf16>
    %2 = arith.extf %1 : vector<128x128xbf16> to vector<128x128xf32>
    %c1 = arith.constant 1 : index
    %c0_2 = arith.constant 0 : index
    %c0_3 = arith.constant 0 : index
    %3 = vector.load %arg2[%c1, %c0_2, %c0_3] : memref<4x128x128xbf16, #tpu.memory_space<vmem>>, vector<1x128x128xbf16>
    %4 = vector.shape_cast %3 : vector<1x128x128xbf16> to vector<128x128xbf16>
    %5 = arith.extf %4 : vector<128x128xbf16> to vector<128x128xf32>
    %c0_4 = arith.constant 0 : index
    %c0_5 = arith.constant 0 : index
    %6 = vector.load %arg1[%c0_4, %c0_5] : memref<128x128xf32, #tpu.memory_space<vmem>>, vector<128x128xf32>
    %cst = arith.constant dense<0.000000e+00> : vector<128x128xf32>
    %7 = tpu.matmul %6, %2, %cst {dimension_numbers = #tpu.dot_dimension_numbers<[1], [0], [0], [1], [0, 0, 1, 1], [], []>} : vector<128x128xf32>, vector<128x128xf32>, vector<128x128xf32> -> vector<128x128xf32>
    %c0_6 = arith.constant 0 : index
    %c0_7 = arith.constant 0 : index
    %8 = vector.load %arg3[%c0_6, %c0_7] : memref<8x128xf32, #tpu.memory_space<vmem>>, vector<1x128xf32>
    %9 = vector.broadcast %8 : vector<1x128xf32> to vector<128x128xf32>
    %10 = arith.addf %7, %9 : vector<128x128xf32>
    %11 = math.tanh %10 : vector<128x128xf32>
    %cst_8 = arith.constant dense<0.000000e+00> : vector<128x128xf32>
    %12 = tpu.matmul %11, %5, %cst_8 {dimension_numbers = #tpu.dot_dimension_numbers<[1], [0], [0], [1], [0, 0, 1, 1], [], []>} : vector<128x128xf32>, vector<128x128xf32>, vector<128x128xf32> -> vector<128x128xf32>
    %c1_9 = arith.constant 1 : index
    %c0_10 = arith.constant 0 : index
    %13 = vector.load %arg3[%c1_9, %c0_10] : memref<8x128xf32, #tpu.memory_space<vmem>>, vector<1x128xf32>
    %14 = vector.broadcast %13 : vector<1x128xf32> to vector<128x128xf32>
    %15 = arith.addf %12, %14 : vector<128x128xf32>
    %16 = math.tanh %15 : vector<128x128xf32>
    %c2 = arith.constant 2 : index
    %c0_11 = arith.constant 0 : index
    %c0_12 = arith.constant 0 : index
    %17 = vector.load %arg2[%c2, %c0_11, %c0_12] : memref<4x128x128xbf16, #tpu.memory_space<vmem>>, vector<1x128x128xbf16>
    %18 = vector.shape_cast %17 : vector<1x128x128xbf16> to vector<128x128xbf16>
    %19 = arith.extf %18 : vector<128x128xbf16> to vector<128x128xf32>
    %cst_13 = arith.constant dense<0.000000e+00> : vector<128x128xf32>
    %20 = tpu.matmul %16, %19, %cst_13 {dimension_numbers = #tpu.dot_dimension_numbers<[1], [0], [0], [1], [0, 0, 1, 1], [], []>} : vector<128x128xf32>, vector<128x128xf32>, vector<128x128xf32> -> vector<128x128xf32>
    %c2_14 = arith.constant 2 : index
    %c0_15 = arith.constant 0 : index
    %21 = vector.load %arg3[%c2_14, %c0_15] : memref<8x128xf32, #tpu.memory_space<vmem>>, vector<1x128xf32>
    %22 = vector.broadcast %21 : vector<1x128xf32> to vector<128x128xf32>
    %23 = arith.addf %20, %22 : vector<128x128xf32>
    %c0_16 = arith.constant 0 : index
    %c0_17 = arith.constant 0 : index
    %24 = vector.load %arg4[%c0_16, %c0_17] : memref<128x128xf32, #tpu.memory_space<vmem>>, vector<128x128xf32>
    tpu.vector_store %arg4[%c0_16, %c0_17], %23 {strides = array<i32>} : memref<128x128xf32, #tpu.memory_space<vmem>>, vector<128x128xf32>,
    %c3 = arith.constant 3 : index
    %c0_18 = arith.constant 0 : index
    %c0_19 = arith.constant 0 : index
    %25 = vector.load %arg2[%c3, %c0_18, %c0_19] : memref<4x128x128xbf16, #tpu.memory_space<vmem>>, vector<1x128x128xbf16>
    %26 = vector.shape_cast %25 : vector<1x128x128xbf16> to vector<128x128xbf16>
    %27 = arith.extf %26 : vector<128x128xbf16> to vector<128x128xf32>
    %cst_20 = arith.constant dense<0.000000e+00> : vector<128x128xf32>
    %28 = tpu.matmul %16, %27, %cst_20 {dimension_numbers = #tpu.dot_dimension_numbers<[1], [0], [0], [1], [0, 0, 1, 1], [], []>} : vector<128x128xf32>, vector<128x128xf32>, vector<128x128xf32> -> vector<128x128xf32>
    %c3_21 = arith.constant 3 : index
    %c0_22 = arith.constant 0 : index
    %29 = vector.load %arg3[%c3_21, %c0_22] : memref<8x128xf32, #tpu.memory_space<vmem>>, vector<1x128xf32>
    %30 = vector.broadcast %29 : vector<1x128xf32> to vector<128x128xf32>
    %31 = arith.addf %28, %30 : vector<128x128xf32>
    %32 = tpu.iota {dimensions = array<i32: 1>} : vector<128x128xi32>
    %c4_i32 = arith.constant 4 : i32
    %33 = vector.broadcast %c4_i32 : i32 to vector<128x128xi32>
    %34 = arith.cmpi slt, %32, %33 : vector<128x128xi32>
    %cst_23 = arith.constant -1.000000e+30 : f32
    %35 = vector.broadcast %cst_23 : f32 to vector<128x128xf32>
    %36 = arith.select %34, %31, %35 : vector<128x128xi1>, vector<128x128xf32>
    %cst_24 = arith.constant dense<0xFF800000> : vector<128xf32>
    %37 = vector.multi_reduction <maximumf>, %36, %cst_24 [1] : vector<128x128xf32> to vector<128xf32>
    %38 = vector.shape_cast %37 : vector<128xf32> to vector<128x1xf32>
    %39 = vector.broadcast %38 : vector<128x1xf32> to vector<128x128xf32>
    %40 = arith.subf %31, %39 : vector<128x128xf32>
    %41 = math.exp %40 : vector<128x128xf32>
    %cst_25 = arith.constant 0.000000e+00 : f32
    %42 = vector.broadcast %cst_25 : f32 to vector<128x128xf32>
    %43 = arith.select %34, %41, %42 : vector<128x128xi1>, vector<128x128xf32>
    %cst_26 = arith.constant dense<0.000000e+00> : vector<128xf32>
    %44 = vector.multi_reduction <add>, %43, %cst_26 [1] : vector<128x128xf32> to vector<128xf32>
    %45 = vector.shape_cast %44 : vector<128xf32> to vector<128x1xf32>
    %46 = tpu.reciprocal %45 : vector<128x1xf32> -> vector<128x1xf32>
    %47 = vector.broadcast %46 : vector<128x1xf32> to vector<128x128xf32>
    %48 = arith.mulf %43, %47 : vector<128x128xf32>
    %c0_27 = arith.constant 0 : index
    %c0_28 = arith.constant 0 : index
    %49 = vector.load %arg5[%c0_27, %c0_28] : memref<128x128xf32, #tpu.memory_space<vmem>>, vector<128x128xf32>
    tpu.vector_store %arg5[%c0_27, %c0_28], %48 {strides = array<i32>} : memref<128x128xf32, #tpu.memory_space<vmem>>, vector<128x128xf32>,
    return
  }
  func.func @transform_0(%arg0: i32) -> (i32, i32) {
    %c0_i32 = arith.constant 0 : i32
    %c0_i32_0 = arith.constant 0 : i32
    return %arg0, %c0_i32 : i32, i32
  }
  func.func @transform_1(%arg0: i32) -> (i32, i32, i32) {
    %c0_i32 = arith.constant 0 : i32
    %c0_i32_0 = arith.constant 0 : i32
    %c0_i32_1 = arith.constant 0 : i32
    %c0_i32_2 = arith.constant 0 : i32
    return %c0_i32, %c0_i32_0, %c0_i32_1 : i32, i32, i32
  }
  func.func @transform_2(%arg0: i32) -> (i32, i32) {
    %c0_i32 = arith.constant 0 : i32
    %c0_i32_0 = arith.constant 0 : i32
    %c0_i32_1 = arith.constant 0 : i32
    return %c0_i32, %c0_i32_0 : i32, i32
  }
  func.func @transform_3(%arg0: i32) -> (i32, i32) {
    %c0_i32 = arith.constant 0 : i32
    %c0_i32_0 = arith.constant 0 : i32
    return %arg0, %c0_i32 : i32, i32
  }
  func.func @transform_4(%arg0: i32) -> (i32, i32) {
    %c0_i32 = arith.constant 0 : i32
    %c0_i32_0 = arith.constant 0 : i32
    return %arg0, %c0_i32 : i32, i32
  }
}

</mosaic_0001>

<bundles_post_ra>
// kernel: tpu_custom_call.1
= control target key start
LH: loop header
LB: loop body
LE: loop exit
PB: predicated region body
PF: predicated region fallthrough
CT: control target
= control target key end

     0   :  { %10 = vsyncpa [#allocation3], 0  ;;  %s2923_s0 = inlined_call_operand.hbm [shape: f32[256,128], index: 0, kind: input, shape index: {}]   ;;  %s2924_s1 = inlined_call_operand.hbm [shape: bf16[4,128,128], index: 1, kind: input, shape index: {}]   ;;  %s2925_s2 = inlined_call_operand.hbm [shape: f32[8,128], index: 2, kind: input, shape index: {}]   ;;  %s2926_s3 = inlined_call_operand.hbm [shape: f32[256,128], index: 3, kind: output, shape index: {0}]   ;;  %s2927_s4 = inlined_call_operand.hbm [shape: f32[256,128], index: 4, kind: output, shape index: {1}]  }
   0x1   :  { %12 = vsyncpa [#allocation3 + $0x1], 0 }
   0x2   :  { %13 = vsyncpa [#allocation6], 0 }
   0x3   :  { %14 = vsyncpa [#allocation4], 0 }
   0x4   :  { %16 = vsyncpa [#allocation4 + $0x1], 0 }
   0x5   :  { %17 = vsyncpa [#allocation10], 0 }
   0x6   :  { %19 = vsyncpa [#allocation10 + $0x1], 0  ;;  %s2365_s15 = smov 0   ;;  %s2367_s16 = smov 0  }
   0x7   :  { %s2369_s17 = smov 0   ;;  %s2371_s18 = smov 0  }
   0x8 LB: > { %s2386_s19 = sadd.s32 4294967295, %s2327_s18   ;;  %s1406_s20 = sadd.s32 4294967294, %s2327_s18   ;;  %s2327_s18 = sphi %s2371_s18, %s2949_s18   ;;  %s2323_s17 = sphi %s2369_s17, %s2948_s17   ;;  %s2319_s16 = sphi %s2367_s16, %s2947_s16   ;;  %s2315_s15 = sphi %s2365_s15, %s2946_s15  }
   0x9   : > { %p45_p0 = scmp.ne.s32.totalorder %s2319_s16, %s2315_s15  ;;  %p2928_p1 = scmp.eq.s32.totalorder %s2386_s19, 0 }
   0xa   : > { %p117_p3 = scmp.eq.s32.totalorder %s1406_s20, 1  ;;  %p1407_p5 = scmp.ge.s32.totalorder %s2327_s18, 1 }
   0xb   : > { %p2395_p4 = por %p2928_p1, %p45_p0  ;;  %p150_p7 = scmp.lt.s32.totalorder %s2327_s18, 3 }
   0xc   : > { %p2400_p6 = por %p117_p3, %p45_p0  ;;  %s2329_s24 = smov [#allocation5]  }
   0xd   : > { %s2932_s21 = scalar_select %p2395_p4, 1, 0 }
   0xe   : > { %s2933_s22 = scalar_select %p2400_p6, 1, 0 }
   0xf   : > { %p2405_p8 = pnand %p1407_p5, %p150_p7  ;;  %s162_s25 = sshll.u32 %s2329_s24, 4  ;;  %s163_s25 = int_to_ptr.vmem [resolvable:$true] %s162_s25 }
  0x10   : > { %s2330_s27 = smov [#allocation7]   ;;  %s2160_s29 = scalar_lea.vmem %s163_s25, 4096 }
  0x11   : > { %s2934_s23 = scalar_select %p2405_p8, 1, 0 }
  0x12   : > { %p1957_p9 = pneg %p2405_p8  ;;  %s176_s28 = sshll.u32 %s2330_s27, 4  ;;  %s177_s28 = int_to_ptr.vmem [resolvable:$true] %s176_s28 }
  0x13   : > { %p2161_p13 = scmp.ne.s32.totalorder %s163_s25, %s2160_s29  ;;  %p2168_p5 = scmp.lt.s32.totalorder %s163_s25, %s163_s25 }
  0x14   : > { %p2414_p11 = pnand %p1957_p9, %p2928_p1  ;;  %p2169_p7 = scmp.lt.s32.totalorder %s2160_s29, %s2160_s29 }
  0x16   : > { %p2151_p12 = pneg %p2414_p11  ;;  %p2170_p10 = por %p2169_p7, %p2168_p5 }
  0x18   : > { %p2163_p0 = pnand %p2161_p13, %p2151_p12 }
  0x1a   : > { %p2164_p3 = pneg %p2163_p0 }
  0x1c   : > { %p2171_p9 = pnand %p2170_p10, %p2164_p3 }
  0x1e   : > { %2174 = shalt.err (!%p2171_p9)
}
  0x1f   : > { %s2331_s30 = smov 64   ;;  %s2332_s5 = smov 4  }
  0x20   : > { %1960 = dma.hbm_to_vmem [thread:$0]  (!%p2414_p11), %s2924_s1, 4096, %s163_s25, [#allocation6], %s2331_s30, %s2331_s30, %s2332_s5  }
  0x21   : > { %s2186_s8 = scalar_lea.vmem %s177_s28, 128  ;;  %p2194_p2 = scmp.lt.s32.totalorder %s177_s28, %s177_s28 }
  0x22   : > { %p2187_p1 = scmp.ne.s32.totalorder %s177_s28, %s2186_s8  ;;  %p2195_p6 = scmp.lt.s32.totalorder %s2186_s8, %s2186_s8 }
  0x24   : > { %p2189_p13 = pnand %p2187_p1, %p2151_p12  ;;  %p2196_p5 = por %p2195_p6, %p2194_p2 }
  0x26   : > { %p2190_p0 = pneg %p2189_p13 }
  0x28   : > { %p2197_p10 = pnand %p2196_p5, %p2190_p0 }
  0x2a   : > { %2200 = shalt.err (!%p2197_p10)
}
  0x2b   : > { %1963 = dma.hbm_to_vmem [thread:$0]  (!%p2414_p11), %s2925_s2, 128, %s177_s28, [#allocation6]  }
  0x2c   : > { %s2437_s11 = sadd.s32 1, %s2327_s18   ;;  %s32_s12 = sadd.s32 1, %s2323_s17 }
  0x2d   : > { %s29_s13 = ssub.s32 %s2327_s18, %s2437_s11  ;;  %p39_p1 = scmp.ne.s32.totalorder %s2323_s17, %s2319_s16 }
  0x2e   : > { %p30_p2 = scmp.eq.s32.totalorder %s29_s13, 0  ;;  %p40_p6 = scmp.eq.s32.totalorder %s2327_s18, 0 }
  0x2f   : > { %p2936_p12 = scmp.eq.s32.totalorder %s2386_s19, 1  ;;  %p1977_p7 = scmp.lt.s32.totalorder %s2327_s18, 2 }
  0x30   : > { %s2453_s20 = scalar_select %p30_p2, %s2323_s17, %s32_s12  }
  0x31   : > { %p2447_p3 = por %p2936_p12, %p39_p1  ;;  %p41_p9 = por %p40_p6, %p39_p1 }
  0x32   : > { %s187_s24 = sand.u32 1, %s2323_s17   ;;  %s1432_s26 = sshll.u32 %s2327_s18, 11 }
  0x33   : > { %s2937_s14 = scalar_select %p2447_p3, 1, 0 }
  0x34   : > { %s1411_s25 = sshll.u32 %s187_s24, 7  ;;  %s2460_s29 = scalar_lea.hbm %s2923_s0, %s1432_s26 }
  0x35   : > { %s191_s30 = scalar_lea.vmem [#allocation2], %s1411_s25  ;;  %p2464_p11 = pnand %p1977_p7, %p41_p9 }
  0x36   : > { %s198_s5 = sshll.u32 %s191_s30, 4  ;;  %s2468_s7 = scalar_lea.sflag [#allocation3], %s187_s24  ;;  %s2462_s5 = int_to_ptr.vmem [resolvable:$true] %s198_s5 }
  0x37   : > { %s2201_s8 = scalar_lea.hbm %s2460_s29, 2048  ;;  %p2203_p0 = pneg %p2464_p11 }
  0x38   : > { %p2202_p13 = scmp.ne.s32.totalorder %s2460_s29, %s2201_s8  ;;  %s2206_s12 = scalar_lea.hbm %s2923_s0, 4096 }
  0x39   : > { %p2207_p1 = scmp.lt.s32.totalorder %s2460_s29, %s2923_s0  ;;  %p2208_p2 = scmp.lt.s32.totalorder %s2206_s12, %s2201_s8 }
  0x3a   : > { %p2204_p5 = pnand %p2203_p0, %p2202_p13 }
  0x3b   : > { %p2209_p6 = por %p2208_p2, %p2207_p1 }
  0x3c   : > { %p2205_p10 = pneg %p2204_p5 }
  0x3e   : > { %p2210_p12 = pnand %p2209_p6, %p2205_p10 }
  0x40   : > { %2213 = shalt.err (!%p2210_p12)
}
  0x41   : > { %s2214_s24 = scalar_lea.vmem %s2462_s5, 2048  ;;  %s2333_s26 = smov [#allocation2]  }
  0x42   : > { %p2215_p7 = scmp.ne.s32.totalorder %s2462_s5, %s2214_s24  ;;  %s2219_s27 = sshll.u32 %s2333_s26, 4  ;;  %s2220_s27 = int_to_ptr.vmem [resolvable:$false] %s2219_s27 }
  0x43   : > { %s2221_s28 = scalar_lea.vmem %s2220_s27, 4096  ;;  %p2222_p5 = scmp.lt.s32.totalorder %s2462_s5, %s2220_s27 }
  0x44   : > { %p2217_p9 = pnand %p2215_p7, %p2203_p0  ;;  %p2223_p3 = scmp.lt.s32.totalorder %s2221_s28, %s2214_s24 }
  0x46   : > { %p2218_p13 = pneg %p2217_p9  ;;  %p2224_p4 = por %p2223_p3, %p2222_p5 }
  0x48   : > { %p2225_p8 = pnand %p2224_p4, %p2218_p13 }
  0x4a   : > { %2228 = shalt.err (!%p2225_p8)
}
  0x4b   : > { %s2334_s30 = smov 128   ;;  %s2335_s8 = smov 8  }
  0x4c   : > { %1967 = dma.hbm_to_vmem [thread:$0]  (!%p2464_p11), %s2460_s29, 2048, %s2462_s5, %s2468_s7, %s2334_s30, %s2334_s30, %s2335_s8  }
  0x4d   : > { %p2939_p0 = scmp.ne.s32.totalorder %s2934_s23, 0 }
  0x4e   : > { %s2492_s9 = sand.u32 (!%p2939_p0), 1, %s2319_s16   ;;  %p2940_p4 = scmp.ne.s32.totalorder (!%p2939_p0), %s2932_s21, 0 }
  0x4f   : > { %210 = sbr.rel (%p2939_p0) target bundleno = 1100 (0x44c), region = 32  ;;  %s2495_s10 = sshll.u32 (!%p2939_p0), %s2492_s9, 7 }
  0x50   : > { %s213_s12 = scalar_lea.sflag (!%p2939_p0), [#allocation3], %s2492_s9  ;;  %s2499_s13 = scalar_lea.vmem (!%p2939_p0), [#allocation2], %s2495_s10 }
  0x54   : > { %2298 = dma.done.wait (%p2940_p4), %s213_s12, 2048  }
  0x55   : > { %2300 = vsyncadd (%p2940_p4), %s213_s12, 4294965248  ;;  %p2941_p8 = scmp.eq.s32.totalorder %s2386_s19, 0 }
  0x57   : > { %2302 = dma.done.wait (%p2941_p8), [#allocation6], 4224   ;;  %p2942_p3 = pmov %p2941_p8 }
  0x58   : > { %v1569_v0 = vld [vmem:[#allocation5 + $0x38] sm:$0xff]   ;;  %v1568_v1 = vld [vmem:[#allocation5 + $0x30] sm:$0xff]   ;;  %v322_v4 = vld [vmem:[%s2499_s13] sm:$0xff]  ;;  %s2577_s21 = scalar_lea.vmem [#allocation8], %s2495_s10  ;;  %s1433_s23 = sshll.u32 %s2386_s19, 11 }
  0x59   : > { %2304 = vsyncadd (%p2942_p3), [#allocation6], 4294963072  ;;  %v1465_v2 = vunpack.c.l.bf16 %v1569_v0  ;;  %v1466_v3 = vunpack.c.h.bf16 %v1569_v0  ;;  %v1462_v5 = vunpack.c.h.bf16 %v1568_v1  ;;  %1751 = vmatprep.mubr.f32.mxu0 %v322_v4  ;;  %v1567_v6 = vld [vmem:[#allocation5 + $0x28] sm:$0xff]   ;;  %v1461_v7 = vunpack.c.l.bf16 %v1568_v1  ;;  %v1566_v9 = vld [vmem:[#allocation5 + $0x20] sm:$0xff]   ;;  %s1266_s29 = sshll.u32 %s2577_s21, 4  ;;  %s2806_s7 = scalar_lea.hbm %s2926_s3, %s1433_s23  ;;  %s2808_s29 = int_to_ptr.vmem [resolvable:$true] %s1266_s29 }
  0x5a   : > { %v1458_v8 = vunpack.c.h.bf16 %v1567_v6  ;;  %v1576_v10 = vld [vmem:[#allocation5 + $0x78] sm:$0xff]   ;;  %v1575_v11 = vld [vmem:[#allocation5 + $0x70] sm:$0xff]   ;;  %v1457_v12 = vunpack.c.l.bf16 %v1567_v6  ;;  %v1454_v15 = vunpack.c.h.bf16 %v1566_v9  ;;  %v1574_v18 = vld [vmem:[#allocation5 + $0x68] sm:$0xff]   ;;  %v1453_v19 = vunpack.c.l.bf16 %v1566_v9  ;;  %s1248_s25 = scalar_lea.sflag [#allocation4], %s2492_s9  ;;  %s2229_s24 = scalar_lea.vmem %s2808_s29, 2048 }
  0x5b   : > { %1719 = vmatprep.subr.mxu0 %v1466_v3  ;;  %v1497_v13 = vunpack.c.l.bf16 %v1576_v10  ;;  %v1498_v14 = vunpack.c.h.bf16 %v1576_v10  ;;  %v1494_v16 = vunpack.c.h.bf16 %v1575_v11  ;;  %v1565_v17 = vld [vmem:[#allocation5 + $0x18] sm:$0xff]   ;;  %v1493_v20 = vunpack.c.l.bf16 %v1575_v11  ;;  %v1564_v23 = vld [vmem:[#allocation5 + $0x10] sm:$0xff]   ;;  %v1563_v27 = vld [vmem:[#allocation5 + $0x8] sm:$0xff]   ;;  %p2230_p11 = scmp.ne.s32.totalorder %s2808_s29, %s2229_s24  ;;  %p2943_p10 = scmp.ne.s32.totalorder %s2937_s14, 0 }
  0x5c   : > { %1720 = vmatpush3.msra.mxu0 %v1466_v3  ;;  %v1450_v21 = vunpack.c.h.bf16 %v1565_v17  ;;  %v1490_v22 = vunpack.c.h.bf16 %v1574_v18  ;;  %v1449_v24 = vunpack.c.l.bf16 %v1565_v17  ;;  %v1489_v25 = vunpack.c.l.bf16 %v1574_v18  ;;  %v1436_v30 = vld [vmem:[#allocation5] sm:$0xff]   ;;  %v323_v34 = vld [vmem:[%s2499_s13 + $0x8] sm:$0xff]  ;;  %v324_v35 = vld [vmem:[%s2499_s13 + $0x10] sm:$0xff]  ;;  %s2336_s26 = smov [#allocation8]  }
  0x5d   : > { %1721 = vmatprep.subr.mxu0 %v1465_v2  ;;  %1775 = vmatprep.subr.mxu1 %v1498_v14  ;;  %v1446_v26 = vunpack.c.h.bf16 %v1564_v23  ;;  %v1445_v28 = vunpack.c.l.bf16 %v1564_v23  ;;  %v1442_v29 = vunpack.c.h.bf16 %v1563_v27  ;;  %v1441_v31 = vunpack.c.l.bf16 %v1563_v27  ;;  %v325_v36 = vld [vmem:[%s2499_s13 + $0x18] sm:$0xff]  ;;  %v326_v37 = vld [vmem:[%s2499_s13 + $0x20] sm:$0xff]  ;;  %v327_v38 = vld [vmem:[%s2499_s13 + $0x28] sm:$0xff]  ;;  %p2231_p1 = pnand %p2230_p11, %p2943_p10  ;;  %s2233_s27 = sshll.u32 %s2336_s26, 4  ;;  %s2234_s27 = int_to_ptr.vmem [resolvable:$false] %s2233_s27 }
  0x5e   : > { %1722 = vmatpush3.msra.mxu0 %v1465_v2  ;;  %1776 = vmatpush3.msra.mxu1 %v1498_v14  ;;  %v1438_v32 = vunpack.c.h.bf16 %v1436_v30  ;;  %v1437_v33 = vunpack.c.l.bf16 %v1436_v30  ;;  %v328_v39 = vld [vmem:[%s2499_s13 + $0x30] sm:$0xff]  ;;  %v329_v40 = vld [vmem:[%s2499_s13 + $0x38] sm:$0xff]  ;;  %v330_v41 = vld [vmem:[%s2499_s13 + $0x40] sm:$0xff]  ;;  %s2235_s28 = scalar_lea.vmem %s2234_s27, 4096  ;;  %p2236_p6 = scmp.lt.s32.totalorder %s2808_s29, %s2234_s27 }
  0x5f   : > { %1723 = vmatprep.subr.mxu0 %v1462_v5  ;;  %1777 = vmatprep.subr.mxu1 %v1497_v13  ;;  %v331_v42 = vld [vmem:[%s2499_s13 + $0x48] sm:$0xff]  ;;  %v332_v43 = vld [vmem:[%s2499_s13 + $0x50] sm:$0xff]  ;;  %v333_v44 = vld [vmem:[%s2499_s13 + $0x58] sm:$0xff]  ;;  %p2232_p2 = pneg %p2231_p1  ;;  %p2237_p12 = scmp.lt.s32.totalorder %s2235_s28, %s2229_s24 }
  0x60   : > { %1724 = vmatpush3.msra.mxu0 %v1462_v5  ;;  %1778 = vmatpush3.msra.mxu1 %v1497_v13  ;;  %v334_v45 = vld [vmem:[%s2499_s13 + $0x60] sm:$0xff]  ;;  %v335_v46 = vld [vmem:[%s2499_s13 + $0x68] sm:$0xff]  ;;  %v336_v47 = vld [vmem:[%s2499_s13 + $0x70] sm:$0xff] }
  0x61   : > { %1725 = vmatprep.subr.mxu0 %v1461_v7  ;;  %1779 = vmatprep.subr.mxu1 %v1494_v16  ;;  %v337_v48 = vld [vmem:[%s2499_s13 + $0x78] sm:$0xff]  ;;  %v1573_v49 = vld [vmem:[#allocation5 + $0x60] sm:$0xff]   ;;  %v1571_v55 = vld [vmem:[#allocation5 + $0x50] sm:$0xff]   ;;  %p2238_p7 = por %p2237_p12, %p2236_p6 }
  0x62   : > { %1726 = vmatpush3.msra.mxu0 %v1461_v7  ;;  %1780 = vmatpush3.msra.mxu1 %v1494_v16  ;;  %v1486_v50 = vunpack.c.h.bf16 %v1573_v49  ;;  %v1485_v51 = vunpack.c.l.bf16 %v1573_v49  ;;  %v1572_v52 = vld [vmem:[#allocation5 + $0x58] sm:$0xff]   ;;  %v1478_v56 = vunpack.c.h.bf16 %v1571_v55  ;;  %v1477_v57 = vunpack.c.l.bf16 %v1571_v55  ;;  %v1570_v58 = vld [vmem:[#allocation5 + $0x48] sm:$0xff]   ;;  %v1468_v61 = vld [vmem:[#allocation5 + $0x40] sm:$0xff]  }
  0x63   : > { %1727 = vmatprep.subr.mxu0 %v1458_v8  ;;  %1781 = vmatprep.subr.mxu1 %v1493_v20  ;;  %v1482_v53 = vunpack.c.h.bf16 %v1572_v52  ;;  %v1481_v54 = vunpack.c.l.bf16 %v1572_v52  ;;  %v1474_v59 = vunpack.c.h.bf16 %v1570_v58  ;;  %v1473_v60 = vunpack.c.l.bf16 %v1570_v58  ;;  %v2525_v0 = vld [vmem:[#allocation5 + $0xf8] sm:$0xff]   ;;  %v1582_v5 = vld [vmem:[#allocation5 + $0xb0] sm:$0xff]   ;;  %v1581_v7 = vld [vmem:[#allocation5 + $0xa8] sm:$0xff]   ;;  %p2239_p9 = pnand %p2238_p7, %p2232_p2 }
  0x64   : > { %1728 = vmatpush3.msra.mxu0 %v1458_v8  ;;  %1782 = vmatpush3.msra.mxu1 %v1493_v20  ;;  %v1470_v62 = vunpack.c.h.bf16 %v1468_v61  ;;  %v1469_v63 = vunpack.c.l.bf16 %v1468_v61  ;;  %v1583_v1 = vld [vmem:[#allocation5 + $0xb8] sm:$0xff]   ;;  %v1562_v2 = vunpack.c.h.bf16 %v2525_v0  ;;  %v1526_v6 = vunpack.c.h.bf16 %v1582_v5  ;;  %v2528_v11 = vld [vmem:[#allocation7] ss:$0 sm:$0xff]  ;;  %v1589_v30 = vld [vmem:[#allocation5 + $0xf0] sm:$0xff]  }
  0x65   : > { %1729 = vmatprep.subr.mxu0 %v1457_v12  ;;  %1783 = vmatprep.subr.mxu1 %v1490_v22  ;;  %v1530_v3 = vunpack.c.h.bf16 %v1583_v1  ;;  %v1529_v4 = vunpack.c.l.bf16 %v1583_v1  ;;  %v1525_v8 = vunpack.c.l.bf16 %v1582_v5  ;;  %v1522_v9 = vunpack.c.h.bf16 %v1581_v7  ;;  %v1587_v49 = vld [vmem:[#allocation5 + $0xe0] sm:$0xff]  }
  0x66   : > { %1730 = vmatpush3.msra.mxu0 %v1457_v12  ;;  %1784 = vmatpush3.msra.mxu1 %v1490_v22  ;;  %v1521_v10 = vunpack.c.l.bf16 %v1581_v7  ;;  %v1550_v55 = vunpack.c.h.bf16 %v1587_v49  ;;  %v1580_v5 = vld [vmem:[#allocation5 + $0xa0] sm:$0xff]   ;;  %v1549_v7 = vunpack.c.l.bf16 %v1587_v49 }
  0x67   : > { %1731 = vmatprep.subr.mxu0 %v1454_v15  ;;  %1785 = vmatprep.subr.mxu1 %v1489_v25 }
  0x68   : > { %1732 = vmatpush3.msra.mxu0 %v1454_v15  ;;  %1786 = vmatpush3.msra.mxu1 %v1489_v25 }
  0x69   : > { %1733 = vmatprep.subr.mxu0 %v1453_v19  ;;  %1787 = vmatprep.subr.mxu1 %v1486_v50 }
  0x6a   : > { %1734 = vmatpush3.msra.mxu0 %v1453_v19  ;;  %1788 = vmatpush3.msra.mxu1 %v1486_v50 }
  0x6b   : > { %1735 = vmatprep.subr.mxu0 %v1450_v21  ;;  %1789 = vmatprep.subr.mxu1 %v1485_v51 }
  0x6c   : > { %1736 = vmatpush3.msra.mxu0 %v1450_v21  ;;  %1790 = vmatpush3.msra.mxu1 %v1485_v51 }
  0x6d   : > { %1737 = vmatprep.subr.mxu0 %v1449_v24  ;;  %1791 = vmatprep.subr.mxu1 %v1482_v53 }
  0x6e   : > { %1738 = vmatpush3.msra.mxu0 %v1449_v24  ;;  %1792 = vmatpush3.msra.mxu1 %v1482_v53 }
  0x6f   : > { %1739 = vmatprep.subr.mxu0 %v1446_v26  ;;  %1793 = vmatprep.subr.mxu1 %v1481_v54 }
  0x70   : > { %1740 = vmatpush3.msra.mxu0 %v1446_v26  ;;  %1794 = vmatpush3.msra.mxu1 %v1481_v54 }
  0x71   : > { %1741 = vmatprep.subr.mxu0 %v1445_v28  ;;  %1795 = vmatprep.subr.mxu1 %v1478_v56 }
  0x72   : > { %1742 = vmatpush3.msra.mxu0 %v1445_v28  ;;  %1796 = vmatpush3.msra.mxu1 %v1478_v56 }
  0x73   : > { %1743 = vmatprep.subr.mxu0 %v1442_v29  ;;  %1797 = vmatprep.subr.mxu1 %v1477_v57 }
  0x74   : > { %1744 = vmatpush3.msra.mxu0 %v1442_v29  ;;  %1798 = vmatpush3.msra.mxu1 %v1477_v57 }
  0x75   : > { %1745 = vmatprep.subr.mxu0 %v1441_v31  ;;  %1799 = vmatprep.subr.mxu1 %v1474_v59 }
  0x76   : > { %1746 = vmatpush3.msra.mxu0 %v1441_v31  ;;  %1800 = vmatpush3.msra.mxu1 %v1474_v59 }
  0x77   : > { %1747 = vmatprep.subr.mxu0 %v1438_v32  ;;  %1801 = vmatprep.subr.mxu1 %v1473_v60 }
  0x78   : > { %1748 = vmatpush3.msra.mxu0 %v1438_v32  ;;  %1802 = vmatpush3.msra.mxu1 %v1473_v60 }
  0x79   : > { %1749 = vmatprep.subr.mxu0 %v1437_v33  ;;  %1803 = vmatprep.subr.mxu1 %v1470_v62 }
  0x7a   : > { %1750 = vmatpush3.msra.mxu0 %v1437_v33  ;;  %1804 = vmatpush3.msra.mxu1 %v1470_v62  ;;  %v1561_v33 = vunpack.c.l.bf16 %v2525_v0 }
  0x7b   : > { %1752 = vmatmul.mubr.f32.vlgmr.msra.gmra.mxu0 %v323_v34  ;;  %1805 = vmatprep.subr.mxu1 %v1469_v63 }
  0x7c   : > { %1754 = vmatprep.mubr.f32.mxu0 %v324_v35  ;;  %1806 = vmatpush3.msra.mxu1 %v1469_v63 }
  0x7d   : > { %1887 = vmatprep.subr.mxu1 %v1562_v2  ;;  %1831 = vmatprep.subr.mxu0 %v1530_v3 }
  0x7e   : > { %1832 = vmatpush3.msra.mxu0 %v1530_v3 }
  0x7f   : > { %1755 = vmatmul.mubr.f32.gmra.mxu0 %v325_v36  ;;  %1833 = vmatprep.subr.mxu0 %v1529_v4 }
  0x80   : > { %1757 = vmatprep.mubr.f32.mxu0 %v326_v37  ;;  %1834 = vmatpush3.msra.mxu0 %v1529_v4  ;;  %v1558_v37 = vunpack.c.h.bf16 %v1589_v30 }
  0x81   : > { %1835 = vmatprep.subr.mxu0 %v1526_v6 }
  0x82   : > { %1836 = vmatpush3.msra.mxu0 %v1526_v6  ;;  %v1518_v6 = vunpack.c.h.bf16 %v1580_v5 }
  0x83   : > { %1758 = vmatmul.mubr.f32.gmra.mxu0 %v327_v38  ;;  %1837 = vmatprep.subr.mxu0 %v1525_v8 }
  0x84   : > { %1760 = vmatprep.mubr.f32.mxu0 %v328_v39  ;;  %1838 = vmatpush3.msra.mxu0 %v1525_v8  ;;  %v1588_v39 = vld [vmem:[#allocation5 + $0xe8] sm:$0xff]   ;;  %v1517_v8 = vunpack.c.l.bf16 %v1580_v5 }
  0x85   : > { %1839 = vmatprep.subr.mxu0 %v1522_v9  ;;  %v1553_v52 = vunpack.c.l.bf16 %v1588_v39 }
  0x86   : > { %1840 = vmatpush3.msra.mxu0 %v1522_v9  ;;  %v1586_v9 = vld [vmem:[#allocation5 + $0xd8] sm:$0xff]  }
  0x87   : > { %1761 = vmatmul.mubr.f32.gmra.mxu0 %v329_v40  ;;  %1841 = vmatprep.subr.mxu0 %v1521_v10 }
  0x88   : > { %1763 = vmatprep.mubr.f32.mxu0 %v330_v41  ;;  %1842 = vmatpush3.msra.mxu0 %v1521_v10  ;;  %v1579_v10 = vld [vmem:[#allocation5 + $0x98] sm:$0xff]  }
  0x89   : > { %1843 = vmatprep.subr.mxu0 %v1518_v6 }
  0x8a   : > { %1844 = vmatpush3.msra.mxu0 %v1518_v6 }
  0x8b   : > { %1764 = vmatmul.mubr.f32.gmra.mxu0 %v331_v42  ;;  %v1557_v42 = vunpack.c.l.bf16 %v1589_v30  ;;  %1845 = vmatprep.subr.mxu0 %v1517_v8 }
  0x8c   : > { %1766 = vmatprep.mubr.f32.mxu0 %v332_v43  ;;  %1846 = vmatpush3.msra.mxu0 %v1517_v8 }
  0x8f   : > { %1767 = vmatmul.mubr.f32.gmra.mxu0 %v333_v44 }
  0x90   : > { %1769 = vmatprep.mubr.f32.mxu0 %v334_v45 }
  0x93   : > { %1770 = vmatmul.mubr.f32.gmra.mxu0 %v335_v46  ;;  %v1554_v46 = vunpack.c.h.bf16 %v1588_v39 }
  0x94   : > { %1772 = vmatprep.mubr.f32.mxu0 %v336_v47 }
  0x97   : > { %1773 = vmatmul.mubr.f32.gmra.mxu0 %v337_v48 }
 0x13b   : > { %v1753_v12 = vpop.f32.mrf.mxu0 }
 0x13c   : > { %v415_v13 = vadd.f32 %v1753_v12, %v2528_v11  ;;  %v1514_v12 = vunpack.c.h.bf16 %v1579_v10 }
 0x13d   : > { %v409_v14 = vpop.f32.mrf.mxu0 }
 0x13e   : > { %v410_v15 = vadd.f32 %v2528_v11, %v409_v14  ;;  %1847 = vmatprep.subr.mxu0 %v1514_v12  ;;  %v1513_v14 = vunpack.c.l.bf16 %v1579_v10 }
 0x13f   : > { %v1756_v16 = vpop.f32.mrf.mxu0  ;;  %1848 = vmatpush3.msra.mxu0 %v1514_v12 }
 0x140   : > { %2021 = vtanh.f32 %v410_v15  ;;  %v425_v17 = vadd.f32 %v1756_v16, %v2528_v11  ;;  %v1585_v15 = vld [vmem:[#allocation5 + $0xd0] sm:$0xff]   ;;  %1849 = vmatprep.subr.mxu0 %v1513_v14 }
 0x141   : > { %2023 = vtanh.f32 %v415_v13  ;;  %v419_v18 = vpop.f32.mrf.mxu0  ;;  %v1545_v13 = vunpack.c.l.bf16 %v1586_v9  ;;  %v1578_v16 = vld [vmem:[#allocation5 + $0x90] sm:$0xff]   ;;  %1850 = vmatpush3.msra.mxu0 %v1513_v14 }
 0x142   : > { %v420_v19 = vadd.f32 %v2528_v11, %v419_v18  ;;  %v1510_v18 = vunpack.c.h.bf16 %v1578_v16 }
 0x143   : > { %v1759_v20 = vpop.f32.mrf.mxu0 }
 0x144   : > { %2025 = vtanh.f32 %v420_v19  ;;  %v435_v21 = vadd.f32 %v1759_v20, %v2528_v11  ;;  %1851 = vmatprep.subr.mxu0 %v1510_v18  ;;  %v1541_v19 = vunpack.c.l.bf16 %v1585_v15  ;;  %v1509_v20 = vunpack.c.l.bf16 %v1578_v16 }
 0x145   : > { %2027 = vtanh.f32 %v425_v17  ;;  %v429_v22 = vpop.f32.mrf.mxu0  ;;  %v1542_v17 = vunpack.c.h.bf16 %v1585_v15  ;;  %1852 = vmatpush3.msra.mxu0 %v1510_v18  ;;  %v1052_v18 = vlaneseq }
 0x146   : > { %v430_v23 = vadd.f32 %v2528_v11, %v429_v22  ;;  %2029 = vtanh.f32 %v435_v21  ;;  %v1584_v21 = vld [vmem:[#allocation5 + $0xc8] sm:$0xff]   ;;  %1853 = vmatprep.subr.mxu0 %v1509_v20 }
 0x147   : > { %v1762_v24 = vpop.f32.mrf.mxu0  ;;  %v1577_v22 = vld [vmem:[#allocation5 + $0x88] sm:$0xff]   ;;  %1854 = vmatpush3.msra.mxu0 %v1509_v20  ;;  %v2567_v20 = vld [vmem:[#allocation7 + $0x2] ss:$0 sm:$0xff] }
 0x148   : > { %2031 = vtanh.f32 %v430_v23  ;;  %v445_v25 = vadd.f32 %v1762_v24, %v2528_v11  ;;  %v1538_v23 = vunpack.c.h.bf16 %v1584_v21  ;;  %v1506_v24 = vunpack.c.h.bf16 %v1577_v22 }
 0x149   : > { %v439_v26 = vpop.f32.mrf.mxu0 }
 0x14a   : > { %v440_v27 = vadd.f32 %v2528_v11, %v439_v26  ;;  %2033 = vtanh.f32 %v445_v25  ;;  %1855 = vmatprep.subr.mxu0 %v1506_v24  ;;  %v1537_v25 = vunpack.c.l.bf16 %v1584_v21  ;;  %v1505_v26 = vunpack.c.l.bf16 %v1577_v22  ;;  %v2569_v21 = vld [vmem:[#allocation7 + $0x3] ss:$0 sm:$0xff] }
 0x14b   : > { %v1765_v28 = vpop.f32.mrf.mxu0  ;;  %1856 = vmatpush3.msra.mxu0 %v1506_v24 }
 0x14c   : > { %2035 = vtanh.f32 %v440_v27  ;;  %v455_v29 = vadd.f32 %v1765_v28, %v2528_v11  ;;  %v1532_v27 = vld [vmem:[#allocation5 + $0xc0] sm:$0xff]   ;;  %1857 = vmatprep.subr.mxu0 %v1505_v26 }
 0x14d   : > { %v2022_v31 = vpop.eup %2021  ;;  %v449_v32 = vpop.f32.mrf.mxu0  ;;  %v1500_v28 = vld [vmem:[#allocation5 + $0x80] sm:$0xff]   ;;  %1858 = vmatpush3.msra.mxu0 %v1505_v26 }
 0x14e   : > { %v2024_v34 = vpop.eup %2023  ;;  %v450_v35 = vadd.f32 %v2528_v11, %v449_v32  ;;  %1807 = vmatprep.mubr.f32.mxu1 %v2022_v31  ;;  %2037 = vtanh.f32 %v455_v29  ;;  %v1534_v29 = vunpack.c.h.bf16 %v1532_v27  ;;  %v1502_v30 = vunpack.c.h.bf16 %v1500_v28 }
 0x14f   : > { %v1768_v36 = vpop.f32.mrf.mxu0  ;;  %1808 = vmatmul.mubr.f32.vlgmr.msra.gmra.mxu1 %v2024_v34  ;;  %v1533_v31 = vunpack.c.l.bf16 %v1532_v27  ;;  %v1501_v32 = vunpack.c.l.bf16 %v1500_v28 }
 0x150   : > { %2039 = vtanh.f32 %v450_v35  ;;  %v465_v38 = vadd.f32 %v1768_v36, %v2528_v11  ;;  %1888 = vmatpush3.msra.mxu1 %v1562_v2  ;;  %1859 = vmatprep.subr.mxu0 %v1502_v30 }
 0x151   : > { %v2026_v40 = vpop.eup %2025  ;;  %v459_v41 = vpop.f32.mrf.mxu0  ;;  %1889 = vmatprep.subr.mxu1 %v1561_v33  ;;  %1860 = vmatpush3.msra.mxu0 %v1502_v30 }
 0x152   : > { %v2028_v43 = vpop.eup %2027  ;;  %v460_v44 = vadd.f32 %v2528_v11, %v459_v41  ;;  %1810 = vmatprep.mubr.f32.mxu1 %v2026_v40  ;;  %1890 = vmatpush3.msra.mxu1 %v1561_v33  ;;  %2041 = vtanh.f32 %v465_v38  ;;  %v2547_v33 = vld [vmem:[#allocation7 + $0x1] ss:$0 sm:$0xff] }
 0x153   : > { %v1771_v45 = vpop.f32.mrf.mxu0  ;;  %1811 = vmatmul.mubr.f32.gmra.mxu1 %v2028_v43  ;;  %1891 = vmatprep.subr.mxu1 %v1558_v37  ;;  %v2030_v47 = vpop.eup %2029 }
 0x154   : > { %2043 = vtanh.f32 %v460_v44  ;;  %v475_v48 = vadd.f32 %v1771_v45, %v2528_v11  ;;  %1892 = vmatpush3.msra.mxu1 %v1558_v37  ;;  %1861 = vmatprep.subr.mxu0 %v1501_v32 }
 0x155   : > { %v2032_v50 = vpop.eup %2031  ;;  %v469_v51 = vpop.f32.mrf.mxu0  ;;  %1893 = vmatprep.subr.mxu1 %v1557_v42  ;;  %1862 = vmatpush3.msra.mxu0 %v1501_v32 }
 0x156   : > { %v470_v53 = vadd.f32 %v2528_v11, %v469_v51  ;;  %1813 = vmatprep.mubr.f32.mxu1 %v2032_v50  ;;  %1894 = vmatpush3.msra.mxu1 %v1557_v42  ;;  %2045 = vtanh.f32 %v475_v48 }
 0x157   : > { %v1774_v54 = vpop.f32.mrf.mxu0  ;;  %1814 = vmatmul.mubr.f32.gmra.mxu1 %v2030_v47  ;;  %1895 = vmatprep.subr.mxu1 %v1554_v46  ;;  %v2034_v56 = vpop.eup %2033 }
 0x158   : > { %2047 = vtanh.f32 %v470_v53  ;;  %v485_v57 = vadd.f32 %v1774_v54, %v2528_v11  ;;  %1896 = vmatpush3.msra.mxu1 %v1554_v46 }
 0x159   : > { %v2036_v58 = vpop.eup %2035  ;;  %v479_v59 = vpop.f32.mrf.mxu0  ;;  %1897 = vmatprep.subr.mxu1 %v1553_v52 }
 0x15a   : > { %v480_v60 = vadd.f32 %v2528_v11, %v479_v59  ;;  %1816 = vmatprep.mubr.f32.mxu1 %v2036_v58  ;;  %1898 = vmatpush3.msra.mxu1 %v1553_v52  ;;  %2049 = vtanh.f32 %v485_v57  ;;  %v1546_v11 = vunpack.c.h.bf16 %v1586_v9 }
 0x15b   : > { %1817 = vmatmul.mubr.f32.gmra.mxu1 %v2034_v56  ;;  %1899 = vmatprep.subr.mxu1 %v1550_v55  ;;  %v2038_v61 = vpop.eup %2037 }
 0x15c   : > { %2051 = vtanh.f32 %v480_v60  ;;  %1900 = vmatpush3.msra.mxu1 %v1550_v55 }
 0x15d   : > { %v2040_v62 = vpop.eup %2039  ;;  %1901 = vmatprep.subr.mxu1 %v1549_v7 }
 0x15e   : > { %1819 = vmatprep.mubr.f32.mxu1 %v2040_v62  ;;  %1902 = vmatpush3.msra.mxu1 %v1549_v7 }
 0x15f   : > { %1820 = vmatmul.mubr.f32.gmra.mxu1 %v2038_v61  ;;  %v2042_v63 = vpop.eup %2041  ;;  %1903 = vmatprep.subr.mxu1 %v1546_v11 }
 0x160   : > { %1904 = vmatpush3.msra.mxu1 %v1546_v11 }
 0x161   : > { %v2044_v0 = vpop.eup %2043  ;;  %1905 = vmatprep.subr.mxu1 %v1545_v13 }
 0x162   : > { %1822 = vmatprep.mubr.f32.mxu1 %v2044_v0  ;;  %1906 = vmatpush3.msra.mxu1 %v1545_v13 }
 0x163   : > { %1823 = vmatmul.mubr.f32.gmra.mxu1 %v2042_v63  ;;  %v2046_v1 = vpop.eup %2045  ;;  %1907 = vmatprep.subr.mxu1 %v1542_v17 }
 0x164   : > { %1908 = vmatpush3.msra.mxu1 %v1542_v17 }
 0x165   : > { %v2048_v2 = vpop.eup %2047  ;;  %1909 = vmatprep.subr.mxu1 %v1541_v19 }
 0x166   : > { %1825 = vmatprep.mubr.f32.mxu1 %v2048_v2  ;;  %1910 = vmatpush3.msra.mxu1 %v1541_v19  ;;  %v2565_v19 = vand.u32 127, %v1052_v18 }
 0x167   : > { %1826 = vmatmul.mubr.f32.gmra.mxu1 %v2046_v1  ;;  %v2050_v3 = vpop.eup %2049  ;;  %1911 = vmatprep.subr.mxu1 %v1538_v23 }
 0x168   : > { %1912 = vmatpush3.msra.mxu1 %v1538_v23  ;;  %vm1054_vm0 = vcmp.lt.s32.totalorder %v2565_v19, 4 }
 0x169   : > { %v2052_v4 = vpop.eup %2051  ;;  %1913 = vmatprep.subr.mxu1 %v1537_v25 }
 0x16a   : > { %1828 = vmatprep.mubr.f32.mxu1 %v2052_v4  ;;  %1914 = vmatpush3.msra.mxu1 %v1537_v25 }
 0x16b   : > { %1829 = vmatmul.mubr.f32.gmra.mxu1 %v2050_v3  ;;  %1915 = vmatprep.subr.mxu1 %v1534_v29 }
 0x16c   : > { %1916 = vmatpush3.msra.mxu1 %v1534_v29 }
 0x16d   : > { %1917 = vmatprep.subr.mxu1 %v1533_v31 }
 0x16e   : > { %1918 = vmatpush3.msra.mxu1 %v1533_v31 }
 0x20f   : > { %v1809_v34 = vpop.f32.mrf.mxu1 }
 0x210   : > { %v581_v35 = vadd.f32 %v1809_v34, %v2547_v33 }
 0x211   : > { %v575_v36 = vpop.f32.mrf.mxu1 }
 0x212   : > { %v576_v37 = vadd.f32 %v2547_v33, %v575_v36 }
 0x213   : > { %v1812_v38 = vpop.f32.mrf.mxu1 }
 0x214   : > { %2053 = vtanh.f32 %v576_v37  ;;  %v591_v39 = vadd.f32 %v1812_v38, %v2547_v33 }
 0x215   : > { %2055 = vtanh.f32 %v581_v35  ;;  %v585_v40 = vpop.f32.mrf.mxu1 }
 0x216   : > { %v586_v41 = vadd.f32 %v2547_v33, %v585_v40 }
 0x217   : > { %v1815_v42 = vpop.f32.mrf.mxu1 }
 0x218   : > { %2057 = vtanh.f32 %v586_v41  ;;  %v601_v43 = vadd.f32 %v1815_v42, %v2547_v33 }
 0x219   : > { %2059 = vtanh.f32 %v591_v39  ;;  %v595_v44 = vpop.f32.mrf.mxu1 }
 0x21a   : > { %v596_v45 = vadd.f32 %v2547_v33, %v595_v44 }
 0x21b   : > { %v1818_v46 = vpop.f32.mrf.mxu1 }
 0x21c   : > { %2061 = vtanh.f32 %v596_v45  ;;  %v611_v47 = vadd.f32 %v1818_v46, %v2547_v33 }
 0x21d   : > { %2063 = vtanh.f32 %v601_v43  ;;  %v605_v48 = vpop.f32.mrf.mxu1 }
 0x21e   : > { %v606_v49 = vadd.f32 %v2547_v33, %v605_v48 }
 0x21f   : > { %v1821_v50 = vpop.f32.mrf.mxu1 }
 0x220   : > { %2065 = vtanh.f32 %v606_v49  ;;  %v621_v52 = vadd.f32 %v1821_v50, %v2547_v33 }
 0x221   : > { %v2054_v51 = vpop.eup %2053  ;;  %2067 = vtanh.f32 %v611_v47  ;;  %v615_v53 = vpop.f32.mrf.mxu1 }
 0x222   : > { %v2056_v54 = vpop.eup %2055  ;;  %v616_v55 = vadd.f32 %v2547_v33, %v615_v53  ;;  %1863 = vmatprep.mubr.f32.mxu0 %v2054_v51  ;;  %1919 = vmatprep.mubr.f32.mxu1 %v2054_v51 }
 0x223   : > { %v1824_v56 = vpop.f32.mrf.mxu1  ;;  %1864 = vmatmul.mubr.f32.vlgmr.msra.gmra.mxu0 %v2056_v54  ;;  %1920 = vmatmul.mubr.f32.vlgmr.msra.gmra.mxu1 %v2056_v54 }
 0x224   : > { %2069 = vtanh.f32 %v616_v55  ;;  %v631_v58 = vadd.f32 %v1824_v56, %v2547_v33 }
 0x225   : > { %v2058_v57 = vpop.eup %2057  ;;  %2071 = vtanh.f32 %v621_v52  ;;  %v625_v59 = vpop.f32.mrf.mxu1 }
 0x226   : > { %v2060_v60 = vpop.eup %2059  ;;  %v626_v61 = vadd.f32 %v2547_v33, %v625_v59  ;;  %1866 = vmatprep.mubr.f32.mxu0 %v2058_v57  ;;  %1922 = vmatprep.mubr.f32.mxu1 %v2058_v57 }
 0x227   : > { %v1827_v62 = vpop.f32.mrf.mxu1  ;;  %1867 = vmatmul.mubr.f32.gmra.mxu0 %v2060_v60  ;;  %1923 = vmatmul.mubr.f32.gmra.mxu1 %v2060_v60 }
 0x228   : > { %2073 = vtanh.f32 %v626_v61  ;;  %v641_v0 = vadd.f32 %v1827_v62, %v2547_v33 }
 0x229   : > { %v2062_v63 = vpop.eup %2061  ;;  %2075 = vtanh.f32 %v631_v58  ;;  %v635_v1 = vpop.f32.mrf.mxu1 }
 0x22a   : > { %v2064_v2 = vpop.eup %2063  ;;  %v636_v3 = vadd.f32 %v2547_v33, %v635_v1  ;;  %1869 = vmatprep.mubr.f32.mxu0 %v2062_v63  ;;  %1925 = vmatprep.mubr.f32.mxu1 %v2062_v63 }
 0x22b   : > { %v1830_v4 = vpop.f32.mrf.mxu1  ;;  %1870 = vmatmul.mubr.f32.gmra.mxu0 %v2064_v2  ;;  %1926 = vmatmul.mubr.f32.gmra.mxu1 %v2064_v2 }
 0x22c   : > { %2077 = vtanh.f32 %v636_v3  ;;  %v651_v6 = vadd.f32 %v1830_v4, %v2547_v33 }
 0x22d   : > { %v2066_v5 = vpop.eup %2065  ;;  %2079 = vtanh.f32 %v641_v0  ;;  %v645_v7 = vpop.f32.mrf.mxu1 }
 0x22e   : > { %v2068_v8 = vpop.eup %2067  ;;  %v646_v9 = vadd.f32 %v2547_v33, %v645_v7  ;;  %1872 = vmatprep.mubr.f32.mxu0 %v2066_v5  ;;  %1928 = vmatprep.mubr.f32.mxu1 %v2066_v5 }
 0x22f   : > { %1873 = vmatmul.mubr.f32.gmra.mxu0 %v2068_v8  ;;  %1929 = vmatmul.mubr.f32.gmra.mxu1 %v2068_v8 }
 0x230   : > { %2081 = vtanh.f32 %v646_v9 }
 0x231   : > { %v2070_v10 = vpop.eup %2069  ;;  %2083 = vtanh.f32 %v651_v6 }
 0x232   : > { %v2072_v11 = vpop.eup %2071  ;;  %1875 = vmatprep.mubr.f32.mxu0 %v2070_v10  ;;  %1931 = vmatprep.mubr.f32.mxu1 %v2070_v10 }
 0x233   : > { %1876 = vmatmul.mubr.f32.gmra.mxu0 %v2072_v11  ;;  %1932 = vmatmul.mubr.f32.gmra.mxu1 %v2072_v11 }
 0x235   : > { %v2074_v12 = vpop.eup %2073 }
 0x236   : > { %v2076_v13 = vpop.eup %2075  ;;  %1878 = vmatprep.mubr.f32.mxu0 %v2074_v12  ;;  %1934 = vmatprep.mubr.f32.mxu1 %v2074_v12 }
 0x237   : > { %1879 = vmatmul.mubr.f32.gmra.mxu0 %v2076_v13  ;;  %1935 = vmatmul.mubr.f32.gmra.mxu1 %v2076_v13 }
 0x239   : > { %v2078_v14 = vpop.eup %2077 }
 0x23a   : > { %v2080_v15 = vpop.eup %2079  ;;  %1881 = vmatprep.mubr.f32.mxu0 %v2078_v14  ;;  %1937 = vmatprep.mubr.f32.mxu1 %v2078_v14 }
 0x23b   : > { %1882 = vmatmul.mubr.f32.gmra.mxu0 %v2080_v15  ;;  %1938 = vmatmul.mubr.f32.gmra.mxu1 %v2080_v15 }
 0x23d   : > { %v2082_v16 = vpop.eup %2081 }
 0x23e   : > { %v2084_v17 = vpop.eup %2083  ;;  %1884 = vmatprep.mubr.f32.mxu0 %v2082_v16  ;;  %1940 = vmatprep.mubr.f32.mxu1 %v2082_v16 }
 0x23f   : > { %1885 = vmatmul.mubr.f32.gmra.mxu0 %v2084_v17  ;;  %1941 = vmatmul.mubr.f32.gmra.mxu1 %v2084_v17 }
 0x2e3   : > { %v1865_v22 = vpop.f32.mrf.mxu0  ;;  %v1921_v23 = vpop.f32.mrf.mxu1 }
 0x2e4   : > { %v780_v24 = vadd.f32 %v1865_v22, %v2567_v20  ;;  %v2574_v25 = vadd.f32 %v1921_v23, %v2569_v21 }
 0x2e5   : > { %v774_v26 = vpop.f32.mrf.mxu0  ;;  %v973_v27 = vpop.f32.mrf.mxu1 }
 0x2e6   : > { %854 = vst [vmem:[%s2577_s21 + $0x8] sm:$0xff] %v780_v24  ;;  %v775_v28 = vadd.f32 %v2567_v20, %v774_v26  ;;  %v2582_v29 = vadd.f32 %v2569_v21, %v973_v27  ;;  %v1056_v30 = vsel %vm1054_vm0, %v2574_v25, -1e+30 }
 0x2e7   : > { %1073 = vmax.xlane.f32.xlu0 %v1056_v30  ;;  %v1868_v31 = vpop.f32.mrf.mxu0  ;;  %v1924_v32 = vpop.f32.mrf.mxu1 }
 0x2e8   : > { %853 = vst [vmem:[%s2577_s21] sm:$0xff] %v775_v28  ;;  %v790_v33 = vadd.f32 %v1868_v31, %v2567_v20  ;;  %v2590_v34 = vadd.f32 %v1924_v32, %v2569_v21  ;;  %v1055_v40 = vsel %vm1054_vm0, %v2582_v29, -1e+30 }
 0x2e9   : > { %v784_v35 = vpop.f32.mrf.mxu0  ;;  %v983_v36 = vpop.f32.mrf.mxu1 }
 0x2ea   : > { %856 = vst [vmem:[%s2577_s21 + $0x18] sm:$0xff] %v790_v33  ;;  %v785_v37 = vadd.f32 %v2567_v20, %v784_v35  ;;  %v2595_v38 = vadd.f32 %v2569_v21, %v983_v36  ;;  %v1058_v39 = vsel %vm1054_vm0, %v2590_v34, -1e+30 }
 0x2eb   : > { %1077 = vmax.xlane.f32.xlu1 %v1058_v39  ;;  %v1927_v41 = vpop.f32.mrf.mxu1  ;;  %1071 = vmax.xlane.f32.xlu0 %v1055_v40  ;;  %v1871_v42 = vpop.f32.mrf.mxu0 }
 0x2ec   : > { %855 = vst [vmem:[%s2577_s21 + $0x10] sm:$0xff] %v785_v37  ;;  %v800_v43 = vadd.f32 %v1871_v42, %v2567_v20  ;;  %v2606_v46 = vadd.f32 %v1927_v41, %v2569_v21  ;;  %v1057_v49 = vsel %vm1054_vm0, %v2595_v38, -1e+30 }
 0x2ed   : > { %v794_v44 = vpop.f32.mrf.mxu0  ;;  %v993_v45 = vpop.f32.mrf.mxu1 }
 0x2ee   : > { %858 = vst [vmem:[%s2577_s21 + $0x28] sm:$0xff] %v800_v43  ;;  %v795_v47 = vadd.f32 %v2567_v20, %v794_v44  ;;  %v2611_v48 = vadd.f32 %v2569_v21, %v993_v45  ;;  %v1060_v59 = vsel %vm1054_vm0, %v2606_v46, -1e+30 }
 0x2ef   : > { %v1930_v50 = vpop.f32.mrf.mxu1  ;;  %1075 = vmax.xlane.f32.xlu1 %v1057_v49  ;;  %v1874_v51 = vpop.f32.mrf.mxu0 }
 0x2f0   : > { %857 = vst [vmem:[%s2577_s21 + $0x20] sm:$0xff] %v795_v47  ;;  %v810_v52 = vadd.f32 %v1874_v51, %v2567_v20  ;;  %v1059_v53 = vsel %vm1054_vm0, %v2611_v48, -1e+30  ;;  %v2622_v56 = vadd.f32 %v1930_v50, %v2569_v21 }
 0x2f1   : > { %v1003_v54 = vpop.f32.mrf.mxu1  ;;  %1079 = vmax.xlane.f32.xlu0 %v1059_v53  ;;  %v804_v55 = vpop.f32.mrf.mxu0 }
 0x2f2   : > { %860 = vst [vmem:[%s2577_s21 + $0x38] sm:$0xff] %v810_v52  ;;  %v2626_v57 = vadd.f32 %v2569_v21, %v1003_v54  ;;  %v805_v58 = vadd.f32 %v2567_v20, %v804_v55  ;;  %v1062_v5 = vsel %vm1054_vm0, %v2622_v56, -1e+30 }
 0x2f3   : > { %v1933_v60 = vpop.f32.mrf.mxu1  ;;  %1081 = vmax.xlane.f32.xlu1 %v1060_v59  ;;  %v1877_v61 = vpop.f32.mrf.mxu0 }
 0x2f4   : > { %859 = vst [vmem:[%s2577_s21 + $0x30] sm:$0xff] %v805_v58  ;;  %v820_v62 = vadd.f32 %v1877_v61, %v2567_v20  ;;  %v1061_v63 = vsel %vm1054_vm0, %v2626_v57, -1e+30  ;;  %v2638_v2 = vadd.f32 %v1933_v60, %v2569_v21 }
 0x2f5   : > { %v1013_v0 = vpop.f32.mrf.mxu1  ;;  %1083 = vmax.xlane.f32.xlu0 %v1061_v63  ;;  %v814_v1 = vpop.f32.mrf.mxu0 }
 0x2f6   : > { %862 = vst [vmem:[%s2577_s21 + $0x48] sm:$0xff] %v820_v62  ;;  %v2642_v3 = vadd.f32 %v2569_v21, %v1013_v0  ;;  %v815_v4 = vadd.f32 %v2567_v20, %v814_v1  ;;  %v1064_v15 = vsel %vm1054_vm0, %v2638_v2, -1e+30 }
 0x2f7   : > { %v1936_v6 = vpop.f32.mrf.mxu1  ;;  %1085 = vmax.xlane.f32.xlu1 %v1062_v5  ;;  %v1880_v7 = vpop.f32.mrf.mxu0 }
 0x2f8   : > { %861 = vst [vmem:[%s2577_s21 + $0x40] sm:$0xff] %v815_v4  ;;  %v830_v8 = vadd.f32 %v1880_v7, %v2567_v20  ;;  %v1063_v9 = vsel %vm1054_vm0, %v2642_v3, -1e+30  ;;  %v2654_v12 = vadd.f32 %v1936_v6, %v2569_v21 }
 0x2f9   : > { %v1023_v10 = vpop.f32.mrf.mxu1  ;;  %1087 = vmax.xlane.f32.xlu0 %v1063_v9  ;;  %v824_v11 = vpop.f32.mrf.mxu0 }
 0x2fa   : > { %864 = vst [vmem:[%s2577_s21 + $0x58] sm:$0xff] %v830_v8  ;;  %v2658_v13 = vadd.f32 %v2569_v21, %v1023_v10  ;;  %v825_v14 = vadd.f32 %v2567_v20, %v824_v11  ;;  %v1066_v30 = vsel %vm1054_vm0, %v2654_v12, -1e+30 }
 0x2fb   : > { %v1939_v16 = vpop.f32.mrf.mxu1  ;;  %1089 = vmax.xlane.f32.xlu1 %v1064_v15  ;;  %v1883_v17 = vpop.f32.mrf.mxu0 }
 0x2fc   : > { %863 = vst [vmem:[%s2577_s21 + $0x50] sm:$0xff] %v825_v14  ;;  %v840_v18 = vadd.f32 %v1883_v17, %v2567_v20  ;;  %v1065_v22 = vsel %vm1054_vm0, %v2658_v13, -1e+30  ;;  %v2670_v26 = vadd.f32 %v1939_v16, %v2569_v21 }
 0x2fd   : > { %v1033_v23 = vpop.f32.mrf.mxu1  ;;  %1091 = vmax.xlane.f32.xlu0 %v1065_v22  ;;  %v834_v24 = vpop.f32.mrf.mxu0 }
 0x2fe   : > { %866 = vst [vmem:[%s2577_s21 + $0x68] sm:$0xff] %v840_v18  ;;  %v2674_v27 = vadd.f32 %v2569_v21, %v1033_v23  ;;  %v835_v28 = vadd.f32 %v2567_v20, %v834_v24  ;;  %v1068_v42 = vsel %vm1054_vm0, %v2670_v26, -1e+30 }
 0x2ff   : > { %v1942_v31 = vpop.f32.mrf.mxu1  ;;  %1093 = vmax.xlane.f32.xlu1 %v1066_v30  ;;  %v1886_v32 = vpop.f32.mrf.mxu0 }
 0x300   : > { %865 = vst [vmem:[%s2577_s21 + $0x60] sm:$0xff] %v835_v28  ;;  %v850_v33 = vadd.f32 %v1886_v32, %v2567_v20  ;;  %v1067_v35 = vsel %vm1054_vm0, %v2674_v27, -1e+30  ;;  %v2686_v39 = vadd.f32 %v1942_v31, %v2569_v21 }
 0x301   : > { %v1043_v36 = vpop.f32.mrf.mxu1  ;;  %1095 = vmax.xlane.f32.xlu0 %v1067_v35  ;;  %v844_v37 = vpop.f32.mrf.mxu0 }
 0x302   : > { %868 = vst [vmem:[%s2577_s21 + $0x78] sm:$0xff] %v850_v33  ;;  %v2690_v40 = vadd.f32 %v2569_v21, %v1043_v36  ;;  %v845_v41 = vadd.f32 %v2567_v20, %v844_v37  ;;  %v1070_v44 = vsel %vm1054_vm0, %v2686_v39, -1e+30 }
 0x303   : > { %1097 = vmax.xlane.f32.xlu1 %v1068_v42 }
 0x304   : > { %867 = vst [vmem:[%s2577_s21 + $0x70] sm:$0xff] %v845_v41  ;;  %v1069_v43 = vsel %vm1054_vm0, %v2690_v40, -1e+30 }
 0x305   : > { %1099 = vmax.xlane.f32.xlu0 %v1069_v43 }
 0x307   : > { %1101 = vmax.xlane.f32.xlu1 %v1070_v44 }
 0x370   : > { %v1074_v21 = vpop.xlane.xlu0 %1073 }
 0x371   : > { %v1104_v45 = vsub.f32 %v2574_v25, %v1074_v21 }
 0x373   : > { %v1121_v20 = vmul.f32 1.442695, %v1104_v45 }
 0x374   : > { %v1078_v47 = vpop.xlane.xlu1 %1077  ;;  %v1072_v49 = vpop.xlane.xlu0 %1071 }
 0x375   : > { %2085 = vpow2.f32 %v1121_v20  ;;  %v1106_v50 = vsub.f32 %v2590_v34, %v1078_v47  ;;  %v1103_v51 = vsub.f32 %v2582_v29, %v1072_v49 }
 0x377   : > { %v1125_v52 = vmul.f32 1.442695, %v1106_v50  ;;  %v1119_v53 = vmul.f32 1.442695, %v1103_v51 }
 0x378   : > { %v1076_v54 = vpop.xlane.xlu1 %1075 }
 0x379   : > { %2087 = vpow2.f32 %v1125_v52  ;;  %v1105_v55 = vsub.f32 %v2595_v38, %v1076_v54 }
 0x37a   : > { %2089 = vpow2.f32 %v1119_v53  ;;  %v1080_v58 = vpop.xlane.xlu0 %1079 }
 0x37b   : > { %v1123_v59 = vmul.f32 1.442695, %v1105_v55  ;;  %v1107_v60 = vsub.f32 %v2611_v48, %v1080_v58 }
 0x37c   : > { %v1082_v25 = vpop.xlane.xlu1 %1081 }
 0x37d   : > { %2091 = vpow2.f32 %v1123_v59  ;;  %v1127_v61 = vmul.f32 1.442695, %v1107_v60  ;;  %v1108_v62 = vsub.f32 %v2606_v46, %v1082_v25 }
 0x37e   : > { %v1084_v63 = vpop.xlane.xlu0 %1083 }
 0x37f   : > { %v1129_v34 = vmul.f32 1.442695, %v1108_v62  ;;  %v1109_v29 = vsub.f32 %v2626_v57, %v1084_v63  ;;  %2093 = vpow2.f32 %v1127_v61 }
 0x380   : > { %v1086_v0 = vpop.xlane.xlu1 %1085 }
 0x381   : > { %2095 = vpow2.f32 %v1129_v34  ;;  %v1131_v1 = vmul.f32 1.442695, %v1109_v29  ;;  %v1110_v38 = vsub.f32 %v2622_v56, %v1086_v0 }
 0x382   : > { %v2086_v4 = vpop.eup %2085  ;;  %v1088_v5 = vpop.xlane.xlu0 %1087 }
 0x383   : > { %v1133_v6 = vmul.f32 1.442695, %v1110_v38  ;;  %v1111_v48 = vsub.f32 %v2642_v3, %v1088_v5  ;;  %v2714_v7 = vsel %vm1054_vm0, %v2086_v4, 0.0  ;;  %2097 = vpow2.f32 %v1131_v1 }
 0x384   : > { %1169 = vadd.xlane.f32.xlu1 %v2714_v7  ;;  %v1090_v46 = vpop.xlane.xlu1 %1089 }
 0x385   : > { %2099 = vpow2.f32 %v1133_v6  ;;  %v1135_v57 = vmul.f32 1.442695, %v1111_v48  ;;  %v1112_v8 = vsub.f32 %v2638_v2, %v1090_v46 }
 0x386   : > { %v2088_v9 = vpop.eup %2087  ;;  %v1092_v10 = vpop.xlane.xlu0 %1091 }
 0x387   : > { %v2090_v56 = vpop.eup %2089  ;;  %v1137_v11 = vmul.f32 1.442695, %v1112_v8  ;;  %v1113_v14 = vsub.f32 %v2658_v13, %v1092_v10  ;;  %v2721_v3 = vsel %vm1054_vm0, %v2088_v9, 0.0  ;;  %2101 = vpow2.f32 %v1135_v57 }
 0x388   : > { %1173 = vadd.xlane.f32.xlu1 %v2721_v3  ;;  %v1094_v15 = vpop.xlane.xlu1 %1093  ;;  %v2726_v16 = vsel %vm1054_vm0, %v2090_v56, 0.0 }
 0x389   : > { %2103 = vpow2.f32 %v1137_v11  ;;  %v1139_v2 = vmul.f32 1.442695, %v1113_v14  ;;  %v1114_v17 = vsub.f32 %v2654_v12, %v1094_v15  ;;  %1167 = vadd.xlane.f32.xlu0 %v2726_v16 }
 0x38a   : > { %v2092_v18 = vpop.eup %2091  ;;  %v1096_v13 = vpop.xlane.xlu0 %1095 }
 0x38b   : > { %v1141_v22 = vmul.f32 1.442695, %v1114_v17  ;;  %v1115_v23 = vsub.f32 %v2674_v27, %v1096_v13  ;;  %v2733_v24 = vsel %vm1054_vm0, %v2092_v18, 0.0  ;;  %2105 = vpow2.f32 %v1139_v2 }
 0x38c   : > { %v1098_v28 = vpop.xlane.xlu1 %1097  ;;  %v2094_v30 = vpop.eup %2093 }
 0x38d   : > { %2107 = vpow2.f32 %v1141_v22  ;;  %v1143_v31 = vmul.f32 1.442695, %v1115_v23  ;;  %v1116_v32 = vsub.f32 %v2670_v26, %v1098_v28  ;;  %1171 = vadd.xlane.f32.xlu0 %v2733_v24  ;;  %v2745_v41 = vsel %vm1054_vm0, %v2094_v30, 0.0 }
 0x38e   : > { %v2096_v12 = vpop.eup %2095  ;;  %v1100_v33 = vpop.xlane.xlu0 %1099 }
 0x38f   : > { %v1145_v35 = vmul.f32 1.442695, %v1116_v32  ;;  %v1117_v36 = vsub.f32 %v2690_v40, %v1100_v33  ;;  %v2740_v27 = vsel %vm1054_vm0, %v2096_v12, 0.0  ;;  %2109 = vpow2.f32 %v1143_v31 }
 0x390   : > { %1177 = vadd.xlane.f32.xlu1 %v2740_v27  ;;  %v1102_v37 = vpop.xlane.xlu1 %1101  ;;  %v2098_v26 = vpop.eup %2097 }
 0x391   : > { %2111 = vpow2.f32 %v1145_v35  ;;  %v1147_v42 = vmul.f32 1.442695, %v1117_v36  ;;  %v1118_v43 = vsub.f32 %v2686_v39, %v1102_v37  ;;  %1175 = vadd.xlane.f32.xlu0 %v2745_v41  ;;  %v2756_v45 = vsel %vm1054_vm0, %v2098_v26, 0.0 }
 0x392   : > { %v2100_v40 = vpop.eup %2099 }
 0x393   : > { %v1149_v44 = vmul.f32 1.442695, %v1118_v43  ;;  %v2751_v21 = vsel %vm1054_vm0, %v2100_v40, 0.0  ;;  %2113 = vpow2.f32 %v1147_v42 }
 0x394   : > { %1181 = vadd.xlane.f32.xlu1 %v2751_v21  ;;  %v2102_v20 = vpop.eup %2101 }
 0x395   : > { %2115 = vpow2.f32 %v1149_v44  ;;  %1179 = vadd.xlane.f32.xlu0 %v2756_v45  ;;  %v2766_v49 = vsel %vm1054_vm0, %v2102_v20, 0.0 }
 0x396   : > { %v2104_v39 = vpop.eup %2103 }
 0x397   : > { %v2761_v47 = vsel %vm1054_vm0, %v2104_v39, 0.0 }
 0x398   : > { %1185 = vadd.xlane.f32.xlu1 %v2761_v47  ;;  %v2106_v50 = vpop.eup %2105 }
 0x399   : > { %1183 = vadd.xlane.f32.xlu0 %v2766_v49  ;;  %v2776_v53 = vsel %vm1054_vm0, %v2106_v50, 0.0 }
 0x39a   : > { %v2108_v51 = vpop.eup %2107 }
 0x39b   : > { %v2771_v52 = vsel %vm1054_vm0, %v2108_v51, 0.0 }
 0x39c   : > { %1189 = vadd.xlane.f32.xlu1 %v2771_v52  ;;  %v2110_v54 = vpop.eup %2109 }
 0x39d   : > { %1187 = vadd.xlane.f32.xlu0 %v2776_v53  ;;  %v2786_v59 = vsel %vm1054_vm0, %v2110_v54, 0.0 }
 0x39e   : > { %v2112_v55 = vpop.eup %2111 }
 0x39f   : > { %v2781_v58 = vsel %vm1054_vm0, %v2112_v55, 0.0 }
 0x3a0   : > { %1193 = vadd.xlane.f32.xlu1 %v2781_v58  ;;  %v2114_v60 = vpop.eup %2113 }
 0x3a1   : > { %1191 = vadd.xlane.f32.xlu0 %v2786_v59  ;;  %v2796_v62 = vsel %vm1054_vm0, %v2114_v60, 0.0 }
 0x3a2   : > { %v2116_v25 = vpop.eup %2115 }
 0x3a3   : > { %v2791_v61 = vsel %vm1054_vm0, %v2116_v25, 0.0 }
 0x3a4   : > { %1197 = vadd.xlane.f32.xlu1 %v2791_v61 }
 0x3a5   : > { %1195 = vadd.xlane.f32.xlu0 %v2796_v62 }
 0x3a6   : > { %2242 = shalt.err (!%p2239_p9)
}
 0x3a7   : > { %s2243_s30 = scalar_lea.hbm %s2806_s7, 2048  ;;  %s2247_s13 = scalar_lea.hbm %s2926_s3, 4096 }
 0x3a8   : > { %p2244_p13 = scmp.ne.s32.totalorder %s2806_s7, %s2243_s30  ;;  %p2248_p4 = scmp.lt.s32.totalorder %s2806_s7, %s2926_s3 }
 0x3a9   : > { %p2249_p8 = scmp.lt.s32.totalorder %s2247_s13, %s2243_s30 }
 0x3aa   : > { %p2245_p5 = pnand %p2244_p13, %p2943_p10 }
 0x3ab   : > { %p2250_p3 = por %p2249_p8, %p2248_p4 }
 0x3ac   : > { %p2246_p0 = pneg %p2245_p5 }
 0x3ae   : > { %p2251_p11 = pnand %p2250_p3, %p2246_p0 }
 0x3b0   : > { %2254 = shalt.err (!%p2251_p11)
}
 0x3b1   : > { %s2337_s6 = smov 128   ;;  %s2338_s24 = smov 8  }
 0x3b2   : > { %1953 = dma.vmem_to_hbm [thread:$0]  (%p2943_p10), %s2808_s29, 2048, %s2806_s7, %s1248_s25, %s2337_s6, %s2337_s6, %s2338_s24  }
 0x3b3   : > { %s2838_s26 = scalar_lea.vmem [#allocation9], %s2495_s10  ;;  %s2875_s25 = scalar_lea.hbm %s2927_s4, %s1433_s23 }
 0x3b4   : > { %s1282_s10 = sshll.u32 %s2838_s26, 4  ;;  %s1253_s27 = scalar_lea.sflag [#allocation10], %s2492_s9  ;;  %s2877_s10 = int_to_ptr.vmem [resolvable:$true] %s1282_s10 }
 0x3b5   : > { %s2255_s28 = scalar_lea.vmem %s2877_s10, 2048  ;;  %s2339_s30 = smov [#allocation9]  }
 0x3b6   : > { %p2256_p1 = scmp.ne.s32.totalorder %s2877_s10, %s2255_s28  ;;  %s2259_s19 = sshll.u32 %s2339_s30, 4  ;;  %s2260_s19 = int_to_ptr.vmem [resolvable:$false] %s2259_s19 }
 0x3b7   : > { %s2261_s8 = scalar_lea.vmem %s2260_s19, 4096  ;;  %p2262_p12 = scmp.lt.s32.totalorder %s2877_s10, %s2260_s19 }
 0x3b8   : > { %p2257_p2 = pnand %p2256_p1, %p2943_p10  ;;  %p2263_p7 = scmp.lt.s32.totalorder %s2261_s8, %s2255_s28 }
 0x3ba   : > { %p2258_p6 = pneg %p2257_p2  ;;  %p2264_p9 = por %p2263_p7, %p2262_p12 }
 0x3bc   : > { %p2265_p13 = pnand %p2264_p9, %p2258_p6 }
 0x40d   : > { %v1170_v19 = vpop.xlane.xlu1 %1169 }
 0x40e   : > { %2117 = vrcp.f32 %v1170_v19 }
 0x411   : > { %v1174_v63 = vpop.xlane.xlu1 %1173 }
 0x412   : > { %2119 = vrcp.f32 %v1174_v63  ;;  %v1168_v34 = vpop.xlane.xlu0 %1167 }
 0x413   : > { %2121 = vrcp.f32 %v1168_v34 }
 0x416   : > { %v1172_v29 = vpop.xlane.xlu0 %1171 }
 0x417   : > { %2123 = vrcp.f32 %v1172_v29 }
 0x419   : > { %v1178_v0 = vpop.xlane.xlu1 %1177 }
 0x41a   : > { %2125 = vrcp.f32 %v1178_v0  ;;  %v1176_v1 = vpop.xlane.xlu0 %1175 }
 0x41b   : > { %v2118_v38 = vpop.eup %2117  ;;  %2127 = vrcp.f32 %v1176_v1 }
 0x41c   : > { %v1216_v4 = vmul.f32 %v2118_v38, %v2714_v7 }
 0x41d   : > { %v1182_v5 = vpop.xlane.xlu1 %1181 }
 0x41e   : > { %1232 = vst [vmem:[%s2838_s26 + $0x8] sm:$0xff] %v1216_v4  ;;  %2129 = vrcp.f32 %v1182_v5  ;;  %v1180_v6 = vpop.xlane.xlu0 %1179 }
 0x41f   : > { %v2120_v48 = vpop.eup %2119  ;;  %2131 = vrcp.f32 %v1180_v6 }
 0x420   : > { %v2122_v46 = vpop.eup %2121  ;;  %v1218_v57 = vmul.f32 %v2120_v48, %v2721_v3 }
 0x421   : > { %v1215_v8 = vmul.f32 %v2122_v46, %v2726_v16  ;;  %v1186_v9 = vpop.xlane.xlu1 %1185 }
 0x422   : > { %1234 = vst [vmem:[%s2838_s26 + $0x18] sm:$0xff] %v1218_v57  ;;  %2133 = vrcp.f32 %v1186_v9  ;;  %v1184_v7 = vpop.xlane.xlu0 %1183 }
 0x423   : > { %1231 = vst [vmem:[%s2838_s26] sm:$0xff] %v1215_v8  ;;  %2135 = vrcp.f32 %v1184_v7 }
 0x424   : > { %v2124_v10 = vpop.eup %2123 }
 0x425   : > { %v1217_v56 = vmul.f32 %v2124_v10, %v2733_v24  ;;  %v1190_v11 = vpop.xlane.xlu1 %1189 }
 0x426   : > { %2137 = vrcp.f32 %v1190_v11  ;;  %v1188_v14 = vpop.xlane.xlu0 %1187 }
 0x427   : > { %v2126_v15 = vpop.eup %2125  ;;  %1233 = vst [vmem:[%s2838_s26 + $0x10] sm:$0xff] %v1217_v56  ;;  %2139 = vrcp.f32 %v1188_v14 }
 0x428   : > { %v2128_v3 = vpop.eup %2127  ;;  %v1220_v16 = vmul.f32 %v2126_v15, %v2740_v27 }
 0x429   : > { %v1219_v2 = vmul.f32 %v2128_v3, %v2745_v41  ;;  %v1194_v17 = vpop.xlane.xlu1 %1193 }
 0x42a   : > { %1236 = vst [vmem:[%s2838_s26 + $0x28] sm:$0xff] %v1220_v16  ;;  %2141 = vrcp.f32 %v1194_v17  ;;  %v1192_v18 = vpop.xlane.xlu0 %1191 }
 0x42b   : > { %v2130_v13 = vpop.eup %2129  ;;  %1235 = vst [vmem:[%s2838_s26 + $0x20] sm:$0xff] %v1219_v2  ;;  %2143 = vrcp.f32 %v1192_v18 }
 0x42c   : > { %v2132_v22 = vpop.eup %2131  ;;  %v1222_v23 = vmul.f32 %v2130_v13, %v2751_v21 }
 0x42d   : > { %v1221_v24 = vmul.f32 %v2132_v22, %v2756_v45  ;;  %v1198_v28 = vpop.xlane.xlu1 %1197 }
 0x42e   : > { %1238 = vst [vmem:[%s2838_s26 + $0x38] sm:$0xff] %v1222_v23  ;;  %2145 = vrcp.f32 %v1198_v28  ;;  %v1196_v30 = vpop.xlane.xlu0 %1195 }
 0x42f   : > { %v2134_v31 = vpop.eup %2133  ;;  %1237 = vst [vmem:[%s2838_s26 + $0x30] sm:$0xff] %v1221_v24  ;;  %2147 = vrcp.f32 %v1196_v30 }
 0x430   : > { %v2136_v32 = vpop.eup %2135  ;;  %v1224_v12 = vmul.f32 %v2134_v31, %v2761_v47 }
 0x431   : > { %v1223_v33 = vmul.f32 %v2136_v32, %v2766_v49 }
 0x432   : > { %1240 = vst [vmem:[%s2838_s26 + $0x48] sm:$0xff] %v1224_v12 }
 0x433   : > { %v2138_v35 = vpop.eup %2137  ;;  %1239 = vst [vmem:[%s2838_s26 + $0x40] sm:$0xff] %v1223_v33 }
 0x434   : > { %v2140_v36 = vpop.eup %2139  ;;  %v1226_v27 = vmul.f32 %v2138_v35, %v2771_v52 }
 0x435   : > { %v1225_v37 = vmul.f32 %v2140_v36, %v2776_v53 }
 0x436   : > { %1242 = vst [vmem:[%s2838_s26 + $0x58] sm:$0xff] %v1226_v27 }
 0x437   : > { %v2142_v41 = vpop.eup %2141  ;;  %1241 = vst [vmem:[%s2838_s26 + $0x50] sm:$0xff] %v1225_v37 }
 0x438   : > { %v2144_v26 = vpop.eup %2143  ;;  %v1228_v42 = vmul.f32 %v2142_v41, %v2781_v58 }
 0x439   : > { %v1227_v43 = vmul.f32 %v2144_v26, %v2786_v59 }
 0x43a   : > { %1244 = vst [vmem:[%s2838_s26 + $0x68] sm:$0xff] %v1228_v42 }
 0x43b   : > { %v2146_v40 = vpop.eup %2145  ;;  %1243 = vst [vmem:[%s2838_s26 + $0x60] sm:$0xff] %v1227_v43 }
 0x43c   : > { %v2148_v44 = vpop.eup %2147  ;;  %v1230_v21 = vmul.f32 %v2146_v40, %v2791_v61 }
 0x43d   : > { %v1229_v45 = vmul.f32 %v2148_v44, %v2796_v62 }
 0x43e   : > { %1246 = vst [vmem:[%s2838_s26 + $0x78] sm:$0xff] %v1230_v21 }
 0x43f   : > { %1245 = vst [vmem:[%s2838_s26 + $0x70] sm:$0xff] %v1229_v45 }
 0x440   : > { %2268 = shalt.err (!%p2265_p13)
}
 0x441   : > { %s2269_s23 = scalar_lea.hbm %s2875_s25, 2048  ;;  %s2273_s13 = scalar_lea.hbm %s2927_s4, 4096 }
 0x442   : > { %p2270_p5 = scmp.ne.s32.totalorder %s2875_s25, %s2269_s23  ;;  %p2274_p8 = scmp.lt.s32.totalorder %s2875_s25, %s2927_s4 }
 0x443   : > { %p2275_p3 = scmp.lt.s32.totalorder %s2273_s13, %s2269_s23 }
 0x444   : > { %p2271_p0 = pnand %p2270_p5, %p2943_p10 }
 0x445   : > { %p2276_p11 = por %p2275_p3, %p2274_p8 }
 0x446   : > { %p2272_p4 = pneg %p2271_p0 }
 0x448   : > { %p2277_p1 = pnand %p2276_p11, %p2272_p4 }
 0x44a   : > { %2280 = shalt.err (!%p2277_p1)
}
 0x44b   : > { %1954 = dma.vmem_to_hbm [thread:$0]  (%p2943_p10), %s2877_s10, 2048, %s2875_s25, %s1253_s27, %s2337_s6, %s2337_s6, %s2338_s24  }
 0x44c PF: > { %s1297_s26 = sand.u32 1, %s2315_s15   ;;  %p2944_p2 = scmp.ne.s32.totalorder %s2933_s22, 0 }
 0x44d   : > { %p2945_p6 = scmp.ge.s32.totalorder %s2327_s18, 2  ;;  %s1298_s29 = scalar_lea.sflag [#allocation4], %s1297_s26 }
 0x44f   : > { %p1969_p12 = pnand %p2945_p6, %p2944_p2 }
 0x451   : > { %p1970_p7 = pneg %p1969_p12 }
 0x453   : > { %2306 = dma.done.wait (%p1970_p7), %s1298_s29, 2048  }
 0x454   : > { %2308 = vsyncadd (%p1970_p7), %s1298_s29, 4294965248  ;;  %s1307_s7 = scalar_lea.sflag [#allocation10], %s1297_s26 }
 0x455   : > { %2310 = dma.done.wait (%p1970_p7), %s1307_s7, 2048  }
 0x456   : > { %2312 = vsyncadd (%p1970_p7), %s1307_s7, 4294965248  ;;  %p22_p10 = scmp.ge.s32.totalorder %s2437_s11, 4   ;;  %s2946_s15 = smov %s2319_s16 }
 0x457   : > { %s2947_s16 = smov %s2323_s17  ;;  %s2948_s17 = smov %s2453_s20 }
 0x458   : > { %s2949_s18 = smov %s2437_s11  ;;  %24 = sbr.rel (!%p22_p10) target bundleno = 8 (0x8), region = 105 }
 0x45d   :  { %1312 = vsyncpa [#allocation3], 1 }
 0x45e   :  { %1314 = vsyncpa [#allocation3 + $0x1], 1 }
 0x45f   :  { %1315 = vsyncpa [#allocation6], 1 }
 0x460   :  { %1316 = vsyncpa [#allocation4], 1 }
 0x461   :  { %1318 = vsyncpa [#allocation4 + $0x1], 1 }
 0x462   :  { %1319 = vsyncpa [#allocation10], 1 }
 0x463   :  { %1321 = vsyncpa [#allocation10 + $0x1], 1 }

</bundles_post_ra>
